<compile_context>
chip_gen: v6e
topology: v6e:2x2x1
jax: 0.10.0
libtpu: 0.0.40
codegen_flags: <defaults>
</compile_context>

<pallas_src>
import functools
import math

import jax
import jax.numpy as jnp
from jax import lax
from jax.experimental import pallas as pl
from jax.experimental.pallas import tpu as pltpu


# ---------------------------------------------------------------------------
# Model configuration (synthetic miniature BERT; lane-dense sizes)
# ---------------------------------------------------------------------------
VOCAB = 64
SEQ = 8
HIDDEN = 128            # multiple of 128 -> lane-dense activations/weights
NUM_HEADS = 2
HEAD_DIM = HIDDEN // NUM_HEADS
INTERMEDIATE = 256      # multiple of 128
NUM_LAYERS = 2
NUM_CLASSES = 5         # TODO(synk): label_map comes from 'train_new_labels.csv'; synthetic 5.
CLS_PAD = 128           # classifier output padded to a full 128-lane vreg
LN_EPS = 1e-12


# ---------------------------------------------------------------------------
# Fused Pallas kernel: whole BERT encoder + pooler + classifier head
# ---------------------------------------------------------------------------
def _bert_fused_kernel(
    # inputs
    x_ref, mask_ref, emb_g_ref, emb_b_ref,
    wqkv_ref, bqkv_ref, wo_ref, bo_ref, ln1g_ref, ln1b_ref,
    w1_ref, b1_ref, w2_ref, b2_ref, ln2g_ref, ln2b_ref,
    poolw_ref, poolb_ref, clsw_ref, clsb_ref,
    # outputs
    out_ref,
    *, batch, seq, hidden, num_heads, head_dim, num_layers,
):
    scale = 1.0 / math.sqrt(head_dim)

    def layernorm(x, g, b):
        mu = jnp.mean(x, axis=-1, keepdims=True)
        var = jnp.mean((x - mu) * (x - mu), axis=-1, keepdims=True)
        return (x - mu) * lax.rsqrt(var + LN_EPS) * g + b

    def mm(a, w_bf16):
        # activations cast to bf16, weights already bf16, f32 accumulation.
        return jnp.dot(a.astype(jnp.bfloat16), w_bf16,
                       preferred_element_type=jnp.float32)

    def mm_nt(a, b):
        # a @ b.T without materializing the transpose (MXU contraction on -1).
        return lax.dot_general(
            a.astype(jnp.bfloat16), b.astype(jnp.bfloat16),
            dimension_numbers=(((1,), (1,)), ((), ())),
            preferred_element_type=jnp.float32)

    # embedding layernorm
    x = layernorm(x_ref[...], emb_g_ref[...], emb_b_ref[...])          # [B*S, H]

    # hoisted per-batch additive mask rows ([1, S] each)
    masks = [mask_ref[b:b + 1, :] for b in range(batch)]

    for li in range(num_layers):
        # --- fused QKV projection: one MXU pass, lane width 3*H ---
        qkv = mm(x, wqkv_ref[li]) + bqkv_ref[li]                        # [B*S, 3H]
        q = qkv[:, 0 * hidden:1 * hidden]
        k = qkv[:, 1 * hidden:2 * hidden]
        v = qkv[:, 2 * hidden:3 * hidden]

        # --- scaled-dot-product attention, heads handled in-kernel.
        #     Context is assembled in registers (lane concat over heads,
        #     sublane concat over batch) -> no sub-vreg scratch stores. ---
        ctx_rows = []
        for b in range(batch):
            m = masks[b]
            r0, r1 = b * seq, (b + 1) * seq
            head_ctx = []
            for h in range(num_heads):
                c0, c1 = h * head_dim, (h + 1) * head_dim
                qh = q[r0:r1, c0:c1]
                kh = k[r0:r1, c0:c1]
                vh = v[r0:r1, c0:c1]
                s = mm_nt(qh, kh) * scale + m                           # [S, S]
                s = s - jnp.max(s, axis=-1, keepdims=True)
                p = jnp.exp(s)
                p = p * pl.reciprocal(jnp.sum(p, axis=-1, keepdims=True),
                                      approx=True)
                head_ctx.append(mm(p, vh.astype(jnp.bfloat16)))         # [S, Dh]
            ctx_rows.append(jnp.concatenate(head_ctx, axis=-1))         # [S, H]
        ctx = jnp.concatenate(ctx_rows, axis=0)                         # [B*S, H]

        attn_out = mm(ctx, wo_ref[li]) + bo_ref[li]
        x = layernorm(x + attn_out, ln1g_ref[li], ln1b_ref[li])

        # --- feed-forward ---
        hmid = mm(x, w1_ref[li]) + b1_ref[li]
        # TODO(synk): HF BERT default is exact (erf) GELU; tanh approx (gelu_new) used here.
        hmid = 0.5 * hmid * (1.0 + jnp.tanh(
            0.7978845608028654 * (hmid + 0.044715 * hmid * hmid * hmid)))
        ffn_out = mm(hmid, w2_ref[li]) + b2_ref[li]
        x = layernorm(x + ffn_out, ln2g_ref[li], ln2b_ref[li])

    # --- pooler + classifier on the [CLS] rows only; single lane-dense
    #     full-block store of the padded (B, 128) logits ---
    cls_rows = jnp.concatenate(
        [x[b * seq:b * seq + 1, :] for b in range(batch)], axis=0)      # [B, H]
    pooled = jnp.tanh(mm(cls_rows, poolw_ref[...]) + poolb_ref[...])    # [B, H]
    out_ref[...] = mm(pooled, clsw_ref[...]) + clsb_ref[...]            # [B, CLS_PAD]


# ---------------------------------------------------------------------------
# Parameter init + forward glue
# ---------------------------------------------------------------------------
def init_params(key):
    keys = jax.random.split(key, 9)

    def rnd(k, shape):
        return jax.random.normal(k, shape, jnp.float32) * 0.02

    return {
        "word_emb": rnd(keys[0], (VOCAB, HIDDEN)),
        "pos_emb": rnd(keys[1], (SEQ, HIDDEN)),
        "type_emb": rnd(keys[2], (1, HIDDEN)),
        "emb_ln_g": jnp.ones((1, HIDDEN), jnp.float32),
        "emb_ln_b": jnp.zeros((1, HIDDEN), jnp.float32),
        # per-layer weights stacked on a leading layer axis
        "wqkv": rnd(keys[3], (NUM_LAYERS, HIDDEN, 3 * HIDDEN)),
        "bqkv": jnp.zeros((NUM_LAYERS, 1, 3 * HIDDEN), jnp.float32),
        "wo": rnd(keys[4], (NUM_LAYERS, HIDDEN, HIDDEN)),
        "bo": jnp.zeros((NUM_LAYERS, 1, HIDDEN), jnp.float32),
        "ln1_g": jnp.ones((NUM_LAYERS, 1, HIDDEN), jnp.float32),
        "ln1_b": jnp.zeros((NUM_LAYERS, 1, HIDDEN), jnp.float32),
        "w1": rnd(keys[5], (NUM_LAYERS, HIDDEN, INTERMEDIATE)),
        "b1": jnp.zeros((NUM_LAYERS, 1, INTERMEDIATE), jnp.float32),
        "w2": rnd(keys[6], (NUM_LAYERS, INTERMEDIATE, HIDDEN)),
        "b2": jnp.zeros((NUM_LAYERS, 1, HIDDEN), jnp.float32),
        "ln2_g": jnp.ones((NUM_LAYERS, 1, HIDDEN), jnp.float32),
        "ln2_b": jnp.zeros((NUM_LAYERS, 1, HIDDEN), jnp.float32),
        "pool_w": rnd(keys[7], (HIDDEN, HIDDEN)),
        "pool_b": jnp.zeros((1, HIDDEN), jnp.float32),
        # classifier padded to 128 output lanes; only first NUM_CLASSES columns
        # are used (output sliced in the wrapper)
        "cls_w": rnd(keys[8], (HIDDEN, CLS_PAD)),
        "cls_b": jnp.zeros((1, CLS_PAD), jnp.float32),
    }


def new_classifier_forward(params, input_ids, attention_mask):
    B, S = input_ids.shape
    # Embedding gathers are plain-JAX glue (data-dependent gather).
    x = (params["word_emb"][input_ids]
         + params["pos_emb"][None, :S, :]
         + params["type_emb"][None, :, :])                              # [B, S, H]
    x2d = x.reshape(B * S, HIDDEN).astype(jnp.float32)

    # additive attention mask: 0 where attended, -1e9 where padded
    add_mask = (1.0 - attention_mask.astype(jnp.float32)) * -1e9        # [B, S]

    bf16 = jnp.bfloat16
    args = (
        x2d, add_mask,
        params["emb_ln_g"], params["emb_ln_b"],
        params["wqkv"].astype(bf16), params["bqkv"],
        params["wo"].astype(bf16), params["bo"],
        params["ln1_g"], params["ln1_b"],
        params["w1"].astype(bf16), params["b1"],
        params["w2"].astype(bf16), params["b2"],
        params["ln2_g"], params["ln2_b"],
        params["pool_w"].astype(bf16), params["pool_b"],
        params["cls_w"].astype(bf16), params["cls_b"],
    )

    kernel = functools.partial(
        _bert_fused_kernel,
        batch=B, seq=S, hidden=HIDDEN, num_heads=NUM_HEADS,
        head_dim=HEAD_DIM, num_layers=NUM_LAYERS,
    )

    logits_pad = pl.pallas_call(
        kernel,
        out_shape=jax.ShapeDtypeStruct((B, CLS_PAD), jnp.float32),
        in_specs=[pl.BlockSpec(memory_space=pltpu.MemorySpace.VMEM)] * len(args),
        out_specs=pl.BlockSpec(memory_space=pltpu.MemorySpace.VMEM),
    )(*args)

    return logits_pad[:, :NUM_CLASSES]


if __name__ == "__main__":
    key = jax.random.PRNGKey(0)
    pkey, dkey = jax.random.split(key)

    params = init_params(pkey)

    B = 2
    input_ids = jax.random.randint(dkey, (B, SEQ), 0, VOCAB, dtype=jnp.int32)
    # first 6 tokens attended, last 2 padded (exercise the mask path)
    attention_mask = jnp.concatenate(
        [jnp.ones((B, 6), jnp.int32), jnp.zeros((B, SEQ - 6), jnp.int32)], axis=1
    )

    fwd = jax.jit(new_classifier_forward)
    logits = jax.block_until_ready(fwd(params, input_ids, attention_mask))
    assert logits.shape == (B, NUM_CLASSES)
    assert bool(jnp.all(jnp.isfinite(logits)))
    print("KERNEL_OK")
</pallas_src>

<mosaic_0001>
module attributes {stable_mosaic.version = 11 : i64} {
  func.func @_bert_fused_kernel(%arg0: memref<16x128xf32, #tpu.memory_space<vmem>>, %arg1: memref<2x8xf32, #tpu.memory_space<vmem>>, %arg2: memref<1x128xf32, #tpu.memory_space<vmem>>, %arg3: memref<1x128xf32, #tpu.memory_space<vmem>>, %arg4: memref<2x128x384xbf16, #tpu.memory_space<vmem>>, %arg5: memref<2x1x384xf32, #tpu.memory_space<vmem>>, %arg6: memref<2x128x128xbf16, #tpu.memory_space<vmem>>, %arg7: memref<2x1x128xf32, #tpu.memory_space<vmem>>, %arg8: memref<2x1x128xf32, #tpu.memory_space<vmem>>, %arg9: memref<2x1x128xf32, #tpu.memory_space<vmem>>, %arg10: memref<2x128x256xbf16, #tpu.memory_space<vmem>>, %arg11: memref<2x1x256xf32, #tpu.memory_space<vmem>>, %arg12: memref<2x256x128xbf16, #tpu.memory_space<vmem>>, %arg13: memref<2x1x128xf32, #tpu.memory_space<vmem>>, %arg14: memref<2x1x128xf32, #tpu.memory_space<vmem>>, %arg15: memref<2x1x128xf32, #tpu.memory_space<vmem>>, %arg16: memref<128x128xbf16, #tpu.memory_space<vmem>>, %arg17: memref<1x128xf32, #tpu.memory_space<vmem>>, %arg18: memref<128x128xbf16, #tpu.memory_space<vmem>>, %arg19: memref<1x128xf32, #tpu.memory_space<vmem>>, %arg20: memref<2x128xf32, #tpu.memory_space<vmem>>) attributes {dimension_semantics = [], scalar_prefetch = 0 : i64, scratch_operands = 0 : i64, tpu.core_type = #tpu.core_type<tc>} {
    %c0 = arith.constant 0 : index
    %c0_0 = arith.constant 0 : index
    %0 = vector.load %arg0[%c0, %c0_0] : memref<16x128xf32, #tpu.memory_space<vmem>>, vector<16x128xf32>
    %c0_1 = arith.constant 0 : index
    %c0_2 = arith.constant 0 : index
    %1 = vector.load %arg2[%c0_1, %c0_2] : memref<1x128xf32, #tpu.memory_space<vmem>>, vector<1x128xf32>
    %c0_3 = arith.constant 0 : index
    %c0_4 = arith.constant 0 : index
    %2 = vector.load %arg3[%c0_3, %c0_4] : memref<1x128xf32, #tpu.memory_space<vmem>>, vector<1x128xf32>
    %cst = arith.constant dense<0.000000e+00> : vector<16xf32>
    %3 = vector.multi_reduction <add>, %0, %cst [1] : vector<16x128xf32> to vector<16xf32>
    %4 = vector.shape_cast %3 : vector<16xf32> to vector<16x1xf32>
    %cst_5 = arith.constant 1.280000e+02 : f32
    %5 = vector.broadcast %cst_5 : f32 to vector<16x1xf32>
    %6 = arith.divf %4, %5 : vector<16x1xf32>
    %7 = vector.broadcast %6 : vector<16x1xf32> to vector<16x128xf32>
    %8 = arith.subf %0, %7 : vector<16x128xf32>
    %9 = vector.broadcast %6 : vector<16x1xf32> to vector<16x128xf32>
    %10 = arith.subf %0, %9 : vector<16x128xf32>
    %11 = arith.mulf %8, %10 : vector<16x128xf32>
    %cst_6 = arith.constant dense<0.000000e+00> : vector<16xf32>
    %12 = vector.multi_reduction <add>, %11, %cst_6 [1] : vector<16x128xf32> to vector<16xf32>
    %13 = vector.shape_cast %12 : vector<16xf32> to vector<16x1xf32>
    %cst_7 = arith.constant 1.280000e+02 : f32
    %14 = vector.broadcast %cst_7 : f32 to vector<16x1xf32>
    %15 = arith.divf %13, %14 : vector<16x1xf32>
    %16 = vector.broadcast %6 : vector<16x1xf32> to vector<16x128xf32>
    %17 = arith.subf %0, %16 : vector<16x128xf32>
    %cst_8 = arith.constant 9.99999996E-13 : f32
    %18 = vector.broadcast %cst_8 : f32 to vector<16x1xf32>
    %19 = arith.addf %15, %18 : vector<16x1xf32>
    %20 = math.rsqrt %19 : vector<16x1xf32>
    %21 = vector.broadcast %20 : vector<16x1xf32> to vector<16x128xf32>
    %22 = arith.mulf %17, %21 : vector<16x128xf32>
    %23 = vector.broadcast %1 : vector<1x128xf32> to vector<16x128xf32>
    %24 = arith.mulf %22, %23 : vector<16x128xf32>
    %25 = vector.broadcast %2 : vector<1x128xf32> to vector<16x128xf32>
    %26 = arith.addf %24, %25 : vector<16x128xf32>
    %c0_9 = arith.constant 0 : index
    %c0_10 = arith.constant 0 : index
    %27 = vector.load %arg1[%c0_9, %c0_10] : memref<2x8xf32, #tpu.memory_space<vmem>>, vector<1x8xf32>
    %c1 = arith.constant 1 : index
    %c0_11 = arith.constant 0 : index
    %28 = vector.load %arg1[%c1, %c0_11] : memref<2x8xf32, #tpu.memory_space<vmem>>, vector<1x8xf32>
    %c0_12 = arith.constant 0 : index
    %c0_13 = arith.constant 0 : index
    %c0_14 = arith.constant 0 : index
    %29 = vector.load %arg4[%c0_12, %c0_13, %c0_14] : memref<2x128x384xbf16, #tpu.memory_space<vmem>>, vector<1x128x384xbf16>
    %30 = vector.shape_cast %29 : vector<1x128x384xbf16> to vector<128x384xbf16>
    %31 = arith.truncf %26 : vector<16x128xf32> to vector<16x128xbf16>
    %cst_15 = arith.constant dense<0.000000e+00> : vector<16x384xf32>
    %32 = tpu.matmul %31, %30, %cst_15 {dimension_numbers = #tpu.dot_dimension_numbers<[1], [0], [0], [1], [0, 0, 1, 1], [], []>} : vector<16x128xbf16>, vector<128x384xbf16>, vector<16x384xf32> -> vector<16x384xf32>
    %c0_16 = arith.constant 0 : index
    %c0_17 = arith.constant 0 : index
    %c0_18 = arith.constant 0 : index
    %33 = vector.load %arg5[%c0_16, %c0_17, %c0_18] : memref<2x1x384xf32, #tpu.memory_space<vmem>>, vector<1x1x384xf32>
    %34 = vector.shape_cast %33 : vector<1x1x384xf32> to vector<1x384xf32>
    %35 = vector.broadcast %34 : vector<1x384xf32> to vector<16x384xf32>
    %36 = arith.addf %32, %35 : vector<16x384xf32>
    %37 = vector.extract_strided_slice %36 {offsets = [0, 0], sizes = [16, 128], strides = [1, 1]} : vector<16x384xf32> to vector<16x128xf32>
    %38 = vector.extract_strided_slice %36 {offsets = [0, 128], sizes = [16, 128], strides = [1, 1]} : vector<16x384xf32> to vector<16x128xf32>
    %39 = vector.extract_strided_slice %36 {offsets = [0, 256], sizes = [16, 128], strides = [1, 1]} : vector<16x384xf32> to vector<16x128xf32>
    %40 = vector.extract_strided_slice %37 {offsets = [0, 0], sizes = [8, 64], strides = [1, 1]} : vector<16x128xf32> to vector<8x64xf32>
    %41 = vector.extract_strided_slice %38 {offsets = [0, 0], sizes = [8, 64], strides = [1, 1]} : vector<16x128xf32> to vector<8x64xf32>
    %42 = vector.extract_strided_slice %39 {offsets = [0, 0], sizes = [8, 64], strides = [1, 1]} : vector<16x128xf32> to vector<8x64xf32>
    %43 = arith.truncf %40 : vector<8x64xf32> to vector<8x64xbf16>
    %44 = arith.truncf %41 : vector<8x64xf32> to vector<8x64xbf16>
    %cst_19 = arith.constant dense<0.000000e+00> : vector<8x8xf32>
    %45 = tpu.matmul %43, %44, %cst_19 {dimension_numbers = #tpu.dot_dimension_numbers<[1], [1], [0], [0], [0, 0, 1, 0], [], []>} : vector<8x64xbf16>, vector<8x64xbf16>, vector<8x8xf32> -> vector<8x8xf32>
    %cst_20 = arith.constant 1.250000e-01 : f32
    %46 = vector.broadcast %cst_20 : f32 to vector<8x8xf32>
    %47 = arith.mulf %45, %46 : vector<8x8xf32>
    %48 = vector.broadcast %27 : vector<1x8xf32> to vector<8x8xf32>
    %49 = arith.addf %47, %48 : vector<8x8xf32>
    %cst_21 = arith.constant dense<0xFF800000> : vector<8xf32>
    %50 = vector.multi_reduction <maximumf>, %49, %cst_21 [1] : vector<8x8xf32> to vector<8xf32>
    %51 = vector.shape_cast %50 : vector<8xf32> to vector<8x1xf32>
    %52 = vector.broadcast %51 : vector<8x1xf32> to vector<8x8xf32>
    %53 = arith.subf %49, %52 : vector<8x8xf32>
    %54 = math.exp %53 : vector<8x8xf32>
    %cst_22 = arith.constant dense<0.000000e+00> : vector<8xf32>
    %55 = vector.multi_reduction <add>, %54, %cst_22 [1] : vector<8x8xf32> to vector<8xf32>
    %56 = vector.shape_cast %55 : vector<8xf32> to vector<8x1xf32>
    %57 = tpu.reciprocal %56 {approx = true} : vector<8x1xf32> -> vector<8x1xf32>
    %58 = vector.broadcast %57 : vector<8x1xf32> to vector<8x8xf32>
    %59 = arith.mulf %54, %58 : vector<8x8xf32>
    %60 = arith.truncf %42 : vector<8x64xf32> to vector<8x64xbf16>
    %61 = arith.truncf %59 : vector<8x8xf32> to vector<8x8xbf16>
    %cst_23 = arith.constant dense<0.000000e+00> : vector<8x64xf32>
    %62 = tpu.matmul %61, %60, %cst_23 {dimension_numbers = #tpu.dot_dimension_numbers<[1], [0], [0], [1], [0, 0, 1, 1], [], []>} : vector<8x8xbf16>, vector<8x64xbf16>, vector<8x64xf32> -> vector<8x64xf32>
    %63 = vector.extract_strided_slice %37 {offsets = [0, 64], sizes = [8, 64], strides = [1, 1]} : vector<16x128xf32> to vector<8x64xf32>
    %64 = vector.extract_strided_slice %38 {offsets = [0, 64], sizes = [8, 64], strides = [1, 1]} : vector<16x128xf32> to vector<8x64xf32>
    %65 = vector.extract_strided_slice %39 {offsets = [0, 64], sizes = [8, 64], strides = [1, 1]} : vector<16x128xf32> to vector<8x64xf32>
    %66 = arith.truncf %63 : vector<8x64xf32> to vector<8x64xbf16>
    %67 = arith.truncf %64 : vector<8x64xf32> to vector<8x64xbf16>
    %cst_24 = arith.constant dense<0.000000e+00> : vector<8x8xf32>
    %68 = tpu.matmul %66, %67, %cst_24 {dimension_numbers = #tpu.dot_dimension_numbers<[1], [1], [0], [0], [0, 0, 1, 0], [], []>} : vector<8x64xbf16>, vector<8x64xbf16>, vector<8x8xf32> -> vector<8x8xf32>
    %cst_25 = arith.constant 1.250000e-01 : f32
    %69 = vector.broadcast %cst_25 : f32 to vector<8x8xf32>
    %70 = arith.mulf %68, %69 : vector<8x8xf32>
    %71 = vector.broadcast %27 : vector<1x8xf32> to vector<8x8xf32>
    %72 = arith.addf %70, %71 : vector<8x8xf32>
    %cst_26 = arith.constant dense<0xFF800000> : vector<8xf32>
    %73 = vector.multi_reduction <maximumf>, %72, %cst_26 [1] : vector<8x8xf32> to vector<8xf32>
    %74 = vector.shape_cast %73 : vector<8xf32> to vector<8x1xf32>
    %75 = vector.broadcast %74 : vector<8x1xf32> to vector<8x8xf32>
    %76 = arith.subf %72, %75 : vector<8x8xf32>
    %77 = math.exp %76 : vector<8x8xf32>
    %cst_27 = arith.constant dense<0.000000e+00> : vector<8xf32>
    %78 = vector.multi_reduction <add>, %77, %cst_27 [1] : vector<8x8xf32> to vector<8xf32>
    %79 = vector.shape_cast %78 : vector<8xf32> to vector<8x1xf32>
    %80 = tpu.reciprocal %79 {approx = true} : vector<8x1xf32> -> vector<8x1xf32>
    %81 = vector.broadcast %80 : vector<8x1xf32> to vector<8x8xf32>
    %82 = arith.mulf %77, %81 : vector<8x8xf32>
    %83 = arith.truncf %65 : vector<8x64xf32> to vector<8x64xbf16>
    %84 = arith.truncf %82 : vector<8x8xf32> to vector<8x8xbf16>
    %cst_28 = arith.constant dense<0.000000e+00> : vector<8x64xf32>
    %85 = tpu.matmul %84, %83, %cst_28 {dimension_numbers = #tpu.dot_dimension_numbers<[1], [0], [0], [1], [0, 0, 1, 1], [], []>} : vector<8x8xbf16>, vector<8x64xbf16>, vector<8x64xf32> -> vector<8x64xf32>
    %86 = tpu.concatenate %62, %85 in 1 : vector<8x64xf32>, vector<8x64xf32> -> vector<8x128xf32>
    %87 = vector.extract_strided_slice %37 {offsets = [8, 0], sizes = [8, 64], strides = [1, 1]} : vector<16x128xf32> to vector<8x64xf32>
    %88 = vector.extract_strided_slice %38 {offsets = [8, 0], sizes = [8, 64], strides = [1, 1]} : vector<16x128xf32> to vector<8x64xf32>
    %89 = vector.extract_strided_slice %39 {offsets = [8, 0], sizes = [8, 64], strides = [1, 1]} : vector<16x128xf32> to vector<8x64xf32>
    %90 = arith.truncf %87 : vector<8x64xf32> to vector<8x64xbf16>
    %91 = arith.truncf %88 : vector<8x64xf32> to vector<8x64xbf16>
    %cst_29 = arith.constant dense<0.000000e+00> : vector<8x8xf32>
    %92 = tpu.matmul %90, %91, %cst_29 {dimension_numbers = #tpu.dot_dimension_numbers<[1], [1], [0], [0], [0, 0, 1, 0], [], []>} : vector<8x64xbf16>, vector<8x64xbf16>, vector<8x8xf32> -> vector<8x8xf32>
    %cst_30 = arith.constant 1.250000e-01 : f32
    %93 = vector.broadcast %cst_30 : f32 to vector<8x8xf32>
    %94 = arith.mulf %92, %93 : vector<8x8xf32>
    %95 = vector.broadcast %28 : vector<1x8xf32> to vector<8x8xf32>
    %96 = arith.addf %94, %95 : vector<8x8xf32>
    %cst_31 = arith.constant dense<0xFF800000> : vector<8xf32>
    %97 = vector.multi_reduction <maximumf>, %96, %cst_31 [1] : vector<8x8xf32> to vector<8xf32>
    %98 = vector.shape_cast %97 : vector<8xf32> to vector<8x1xf32>
    %99 = vector.broadcast %98 : vector<8x1xf32> to vector<8x8xf32>
    %100 = arith.subf %96, %99 : vector<8x8xf32>
    %101 = math.exp %100 : vector<8x8xf32>
    %cst_32 = arith.constant dense<0.000000e+00> : vector<8xf32>
    %102 = vector.multi_reduction <add>, %101, %cst_32 [1] : vector<8x8xf32> to vector<8xf32>
    %103 = vector.shape_cast %102 : vector<8xf32> to vector<8x1xf32>
    %104 = tpu.reciprocal %103 {approx = true} : vector<8x1xf32> -> vector<8x1xf32>
    %105 = vector.broadcast %104 : vector<8x1xf32> to vector<8x8xf32>
    %106 = arith.mulf %101, %105 : vector<8x8xf32>
    %107 = arith.truncf %89 : vector<8x64xf32> to vector<8x64xbf16>
    %108 = arith.truncf %106 : vector<8x8xf32> to vector<8x8xbf16>
    %cst_33 = arith.constant dense<0.000000e+00> : vector<8x64xf32>
    %109 = tpu.matmul %108, %107, %cst_33 {dimension_numbers = #tpu.dot_dimension_numbers<[1], [0], [0], [1], [0, 0, 1, 1], [], []>} : vector<8x8xbf16>, vector<8x64xbf16>, vector<8x64xf32> -> vector<8x64xf32>
    %110 = vector.extract_strided_slice %37 {offsets = [8, 64], sizes = [8, 64], strides = [1, 1]} : vector<16x128xf32> to vector<8x64xf32>
    %111 = vector.extract_strided_slice %38 {offsets = [8, 64], sizes = [8, 64], strides = [1, 1]} : vector<16x128xf32> to vector<8x64xf32>
    %112 = vector.extract_strided_slice %39 {offsets = [8, 64], sizes = [8, 64], strides = [1, 1]} : vector<16x128xf32> to vector<8x64xf32>
    %113 = arith.truncf %110 : vector<8x64xf32> to vector<8x64xbf16>
    %114 = arith.truncf %111 : vector<8x64xf32> to vector<8x64xbf16>
    %cst_34 = arith.constant dense<0.000000e+00> : vector<8x8xf32>
    %115 = tpu.matmul %113, %114, %cst_34 {dimension_numbers = #tpu.dot_dimension_numbers<[1], [1], [0], [0], [0, 0, 1, 0], [], []>} : vector<8x64xbf16>, vector<8x64xbf16>, vector<8x8xf32> -> vector<8x8xf32>
    %cst_35 = arith.constant 1.250000e-01 : f32
    %116 = vector.broadcast %cst_35 : f32 to vector<8x8xf32>
    %117 = arith.mulf %115, %116 : vector<8x8xf32>
    %118 = vector.broadcast %28 : vector<1x8xf32> to vector<8x8xf32>
    %119 = arith.addf %117, %118 : vector<8x8xf32>
    %cst_36 = arith.constant dense<0xFF800000> : vector<8xf32>
    %120 = vector.multi_reduction <maximumf>, %119, %cst_36 [1] : vector<8x8xf32> to vector<8xf32>
    %121 = vector.shape_cast %120 : vector<8xf32> to vector<8x1xf32>
    %122 = vector.broadcast %121 : vector<8x1xf32> to vector<8x8xf32>
    %123 = arith.subf %119, %122 : vector<8x8xf32>
    %124 = math.exp %123 : vector<8x8xf32>
    %cst_37 = arith.constant dense<0.000000e+00> : vector<8xf32>
    %125 = vector.multi_reduction <add>, %124, %cst_37 [1] : vector<8x8xf32> to vector<8xf32>
    %126 = vector.shape_cast %125 : vector<8xf32> to vector<8x1xf32>
    %127 = tpu.reciprocal %126 {approx = true} : vector<8x1xf32> -> vector<8x1xf32>
    %128 = vector.broadcast %127 : vector<8x1xf32> to vector<8x8xf32>
    %129 = arith.mulf %124, %128 : vector<8x8xf32>
    %130 = arith.truncf %112 : vector<8x64xf32> to vector<8x64xbf16>
    %131 = arith.truncf %129 : vector<8x8xf32> to vector<8x8xbf16>
    %cst_38 = arith.constant dense<0.000000e+00> : vector<8x64xf32>
    %132 = tpu.matmul %131, %130, %cst_38 {dimension_numbers = #tpu.dot_dimension_numbers<[1], [0], [0], [1], [0, 0, 1, 1], [], []>} : vector<8x8xbf16>, vector<8x64xbf16>, vector<8x64xf32> -> vector<8x64xf32>
    %133 = tpu.concatenate %109, %132 in 1 : vector<8x64xf32>, vector<8x64xf32> -> vector<8x128xf32>
    %134 = tpu.concatenate %86, %133 in 0 : vector<8x128xf32>, vector<8x128xf32> -> vector<16x128xf32>
    %c0_39 = arith.constant 0 : index
    %c0_40 = arith.constant 0 : index
    %c0_41 = arith.constant 0 : index
    %135 = vector.load %arg6[%c0_39, %c0_40, %c0_41] : memref<2x128x128xbf16, #tpu.memory_space<vmem>>, vector<1x128x128xbf16>
    %136 = vector.shape_cast %135 : vector<1x128x128xbf16> to vector<128x128xbf16>
    %137 = arith.truncf %134 : vector<16x128xf32> to vector<16x128xbf16>
    %cst_42 = arith.constant dense<0.000000e+00> : vector<16x128xf32>
    %138 = tpu.matmul %137, %136, %cst_42 {dimension_numbers = #tpu.dot_dimension_numbers<[1], [0], [0], [1], [0, 0, 1, 1], [], []>} : vector<16x128xbf16>, vector<128x128xbf16>, vector<16x128xf32> -> vector<16x128xf32>
    %c0_43 = arith.constant 0 : index
    %c0_44 = arith.constant 0 : index
    %c0_45 = arith.constant 0 : index
    %139 = vector.load %arg7[%c0_43, %c0_44, %c0_45] : memref<2x1x128xf32, #tpu.memory_space<vmem>>, vector<1x1x128xf32>
    %140 = vector.shape_cast %139 : vector<1x1x128xf32> to vector<1x128xf32>
    %141 = vector.broadcast %140 : vector<1x128xf32> to vector<16x128xf32>
    %142 = arith.addf %138, %141 : vector<16x128xf32>
    %143 = arith.addf %26, %142 : vector<16x128xf32>
    %c0_46 = arith.constant 0 : index
    %c0_47 = arith.constant 0 : index
    %c0_48 = arith.constant 0 : index
    %144 = vector.load %arg8[%c0_46, %c0_47, %c0_48] : memref<2x1x128xf32, #tpu.memory_space<vmem>>, vector<1x1x128xf32>
    %145 = vector.shape_cast %144 : vector<1x1x128xf32> to vector<1x128xf32>
    %c0_49 = arith.constant 0 : index
    %c0_50 = arith.constant 0 : index
    %c0_51 = arith.constant 0 : index
    %146 = vector.load %arg9[%c0_49, %c0_50, %c0_51] : memref<2x1x128xf32, #tpu.memory_space<vmem>>, vector<1x1x128xf32>
    %147 = vector.shape_cast %146 : vector<1x1x128xf32> to vector<1x128xf32>
    %cst_52 = arith.constant dense<0.000000e+00> : vector<16xf32>
    %148 = vector.multi_reduction <add>, %143, %cst_52 [1] : vector<16x128xf32> to vector<16xf32>
    %149 = vector.shape_cast %148 : vector<16xf32> to vector<16x1xf32>
    %cst_53 = arith.constant 1.280000e+02 : f32
    %150 = vector.broadcast %cst_53 : f32 to vector<16x1xf32>
    %151 = arith.divf %149, %150 : vector<16x1xf32>
    %152 = vector.broadcast %151 : vector<16x1xf32> to vector<16x128xf32>
    %153 = arith.subf %143, %152 : vector<16x128xf32>
    %154 = vector.broadcast %151 : vector<16x1xf32> to vector<16x128xf32>
    %155 = arith.subf %143, %154 : vector<16x128xf32>
    %156 = arith.mulf %153, %155 : vector<16x128xf32>
    %cst_54 = arith.constant dense<0.000000e+00> : vector<16xf32>
    %157 = vector.multi_reduction <add>, %156, %cst_54 [1] : vector<16x128xf32> to vector<16xf32>
    %158 = vector.shape_cast %157 : vector<16xf32> to vector<16x1xf32>
    %cst_55 = arith.constant 1.280000e+02 : f32
    %159 = vector.broadcast %cst_55 : f32 to vector<16x1xf32>
    %160 = arith.divf %158, %159 : vector<16x1xf32>
    %161 = vector.broadcast %151 : vector<16x1xf32> to vector<16x128xf32>
    %162 = arith.subf %143, %161 : vector<16x128xf32>
    %cst_56 = arith.constant 9.99999996E-13 : f32
    %163 = vector.broadcast %cst_56 : f32 to vector<16x1xf32>
    %164 = arith.addf %160, %163 : vector<16x1xf32>
    %165 = math.rsqrt %164 : vector<16x1xf32>
    %166 = vector.broadcast %165 : vector<16x1xf32> to vector<16x128xf32>
    %167 = arith.mulf %162, %166 : vector<16x128xf32>
    %168 = vector.broadcast %145 : vector<1x128xf32> to vector<16x128xf32>
    %169 = arith.mulf %167, %168 : vector<16x128xf32>
    %170 = vector.broadcast %147 : vector<1x128xf32> to vector<16x128xf32>
    %171 = arith.addf %169, %170 : vector<16x128xf32>
    %c0_57 = arith.constant 0 : index
    %c0_58 = arith.constant 0 : index
    %c0_59 = arith.constant 0 : index
    %172 = vector.load %arg10[%c0_57, %c0_58, %c0_59] : memref<2x128x256xbf16, #tpu.memory_space<vmem>>, vector<1x128x256xbf16>
    %173 = vector.shape_cast %172 : vector<1x128x256xbf16> to vector<128x256xbf16>
    %174 = arith.truncf %171 : vector<16x128xf32> to vector<16x128xbf16>
    %cst_60 = arith.constant dense<0.000000e+00> : vector<16x256xf32>
    %175 = tpu.matmul %174, %173, %cst_60 {dimension_numbers = #tpu.dot_dimension_numbers<[1], [0], [0], [1], [0, 0, 1, 1], [], []>} : vector<16x128xbf16>, vector<128x256xbf16>, vector<16x256xf32> -> vector<16x256xf32>
    %c0_61 = arith.constant 0 : index
    %c0_62 = arith.constant 0 : index
    %c0_63 = arith.constant 0 : index
    %176 = vector.load %arg11[%c0_61, %c0_62, %c0_63] : memref<2x1x256xf32, #tpu.memory_space<vmem>>, vector<1x1x256xf32>
    %177 = vector.shape_cast %176 : vector<1x1x256xf32> to vector<1x256xf32>
    %178 = vector.broadcast %177 : vector<1x256xf32> to vector<16x256xf32>
    %179 = arith.addf %175, %178 : vector<16x256xf32>
    %cst_64 = arith.constant 5.000000e-01 : f32
    %180 = vector.broadcast %cst_64 : f32 to vector<16x256xf32>
    %181 = arith.mulf %180, %179 : vector<16x256xf32>
    %cst_65 = arith.constant 4.471500e-02 : f32
    %182 = vector.broadcast %cst_65 : f32 to vector<16x256xf32>
    %183 = arith.mulf %182, %179 : vector<16x256xf32>
    %184 = arith.mulf %183, %179 : vector<16x256xf32>
    %185 = arith.mulf %184, %179 : vector<16x256xf32>
    %186 = arith.addf %179, %185 : vector<16x256xf32>
    %cst_66 = arith.constant 0.797884583 : f32
    %187 = vector.broadcast %cst_66 : f32 to vector<16x256xf32>
    %188 = arith.mulf %187, %186 : vector<16x256xf32>
    %189 = math.tanh %188 : vector<16x256xf32>
    %cst_67 = arith.constant 1.000000e+00 : f32
    %190 = vector.broadcast %cst_67 : f32 to vector<16x256xf32>
    %191 = arith.addf %190, %189 : vector<16x256xf32>
    %192 = arith.mulf %181, %191 : vector<16x256xf32>
    %c0_68 = arith.constant 0 : index
    %c0_69 = arith.constant 0 : index
    %c0_70 = arith.constant 0 : index
    %193 = vector.load %arg12[%c0_68, %c0_69, %c0_70] : memref<2x256x128xbf16, #tpu.memory_space<vmem>>, vector<1x256x128xbf16>
    %194 = vector.shape_cast %193 : vector<1x256x128xbf16> to vector<256x128xbf16>
    %195 = arith.truncf %192 : vector<16x256xf32> to vector<16x256xbf16>
    %cst_71 = arith.constant dense<0.000000e+00> : vector<16x128xf32>
    %196 = tpu.matmul %195, %194, %cst_71 {dimension_numbers = #tpu.dot_dimension_numbers<[1], [0], [0], [1], [0, 0, 1, 1], [], []>} : vector<16x256xbf16>, vector<256x128xbf16>, vector<16x128xf32> -> vector<16x128xf32>
    %c0_72 = arith.constant 0 : index
    %c0_73 = arith.constant 0 : index
    %c0_74 = arith.constant 0 : index
    %197 = vector.load %arg13[%c0_72, %c0_73, %c0_74] : memref<2x1x128xf32, #tpu.memory_space<vmem>>, vector<1x1x128xf32>
    %198 = vector.shape_cast %197 : vector<1x1x128xf32> to vector<1x128xf32>
    %199 = vector.broadcast %198 : vector<1x128xf32> to vector<16x128xf32>
    %200 = arith.addf %196, %199 : vector<16x128xf32>
    %201 = arith.addf %171, %200 : vector<16x128xf32>
    %c0_75 = arith.constant 0 : index
    %c0_76 = arith.constant 0 : index
    %c0_77 = arith.constant 0 : index
    %202 = vector.load %arg14[%c0_75, %c0_76, %c0_77] : memref<2x1x128xf32, #tpu.memory_space<vmem>>, vector<1x1x128xf32>
    %203 = vector.shape_cast %202 : vector<1x1x128xf32> to vector<1x128xf32>
    %c0_78 = arith.constant 0 : index
    %c0_79 = arith.constant 0 : index
    %c0_80 = arith.constant 0 : index
    %204 = vector.load %arg15[%c0_78, %c0_79, %c0_80] : memref<2x1x128xf32, #tpu.memory_space<vmem>>, vector<1x1x128xf32>
    %205 = vector.shape_cast %204 : vector<1x1x128xf32> to vector<1x128xf32>
    %cst_81 = arith.constant dense<0.000000e+00> : vector<16xf32>
    %206 = vector.multi_reduction <add>, %201, %cst_81 [1] : vector<16x128xf32> to vector<16xf32>
    %207 = vector.shape_cast %206 : vector<16xf32> to vector<16x1xf32>
    %cst_82 = arith.constant 1.280000e+02 : f32
    %208 = vector.broadcast %cst_82 : f32 to vector<16x1xf32>
    %209 = arith.divf %207, %208 : vector<16x1xf32>
    %210 = vector.broadcast %209 : vector<16x1xf32> to vector<16x128xf32>
    %211 = arith.subf %201, %210 : vector<16x128xf32>
    %212 = vector.broadcast %209 : vector<16x1xf32> to vector<16x128xf32>
    %213 = arith.subf %201, %212 : vector<16x128xf32>
    %214 = arith.mulf %211, %213 : vector<16x128xf32>
    %cst_83 = arith.constant dense<0.000000e+00> : vector<16xf32>
    %215 = vector.multi_reduction <add>, %214, %cst_83 [1] : vector<16x128xf32> to vector<16xf32>
    %216 = vector.shape_cast %215 : vector<16xf32> to vector<16x1xf32>
    %cst_84 = arith.constant 1.280000e+02 : f32
    %217 = vector.broadcast %cst_84 : f32 to vector<16x1xf32>
    %218 = arith.divf %216, %217 : vector<16x1xf32>
    %219 = vector.broadcast %209 : vector<16x1xf32> to vector<16x128xf32>
    %220 = arith.subf %201, %219 : vector<16x128xf32>
    %cst_85 = arith.constant 9.99999996E-13 : f32
    %221 = vector.broadcast %cst_85 : f32 to vector<16x1xf32>
    %222 = arith.addf %218, %221 : vector<16x1xf32>
    %223 = math.rsqrt %222 : vector<16x1xf32>
    %224 = vector.broadcast %223 : vector<16x1xf32> to vector<16x128xf32>
    %225 = arith.mulf %220, %224 : vector<16x128xf32>
    %226 = vector.broadcast %203 : vector<1x128xf32> to vector<16x128xf32>
    %227 = arith.mulf %225, %226 : vector<16x128xf32>
    %228 = vector.broadcast %205 : vector<1x128xf32> to vector<16x128xf32>
    %229 = arith.addf %227, %228 : vector<16x128xf32>
    %c1_86 = arith.constant 1 : index
    %c0_87 = arith.constant 0 : index
    %c0_88 = arith.constant 0 : index
    %230 = vector.load %arg4[%c1_86, %c0_87, %c0_88] : memref<2x128x384xbf16, #tpu.memory_space<vmem>>, vector<1x128x384xbf16>
    %231 = vector.shape_cast %230 : vector<1x128x384xbf16> to vector<128x384xbf16>
    %232 = arith.truncf %229 : vector<16x128xf32> to vector<16x128xbf16>
    %cst_89 = arith.constant dense<0.000000e+00> : vector<16x384xf32>
    %233 = tpu.matmul %232, %231, %cst_89 {dimension_numbers = #tpu.dot_dimension_numbers<[1], [0], [0], [1], [0, 0, 1, 1], [], []>} : vector<16x128xbf16>, vector<128x384xbf16>, vector<16x384xf32> -> vector<16x384xf32>
    %c1_90 = arith.constant 1 : index
    %c0_91 = arith.constant 0 : index
    %c0_92 = arith.constant 0 : index
    %234 = vector.load %arg5[%c1_90, %c0_91, %c0_92] : memref<2x1x384xf32, #tpu.memory_space<vmem>>, vector<1x1x384xf32>
    %235 = vector.shape_cast %234 : vector<1x1x384xf32> to vector<1x384xf32>
    %236 = vector.broadcast %235 : vector<1x384xf32> to vector<16x384xf32>
    %237 = arith.addf %233, %236 : vector<16x384xf32>
    %238 = vector.extract_strided_slice %237 {offsets = [0, 0], sizes = [16, 128], strides = [1, 1]} : vector<16x384xf32> to vector<16x128xf32>
    %239 = vector.extract_strided_slice %237 {offsets = [0, 128], sizes = [16, 128], strides = [1, 1]} : vector<16x384xf32> to vector<16x128xf32>
    %240 = vector.extract_strided_slice %237 {offsets = [0, 256], sizes = [16, 128], strides = [1, 1]} : vector<16x384xf32> to vector<16x128xf32>
    %241 = vector.extract_strided_slice %238 {offsets = [0, 0], sizes = [8, 64], strides = [1, 1]} : vector<16x128xf32> to vector<8x64xf32>
    %242 = vector.extract_strided_slice %239 {offsets = [0, 0], sizes = [8, 64], strides = [1, 1]} : vector<16x128xf32> to vector<8x64xf32>
    %243 = vector.extract_strided_slice %240 {offsets = [0, 0], sizes = [8, 64], strides = [1, 1]} : vector<16x128xf32> to vector<8x64xf32>
    %244 = arith.truncf %241 : vector<8x64xf32> to vector<8x64xbf16>
    %245 = arith.truncf %242 : vector<8x64xf32> to vector<8x64xbf16>
    %cst_93 = arith.constant dense<0.000000e+00> : vector<8x8xf32>
    %246 = tpu.matmul %244, %245, %cst_93 {dimension_numbers = #tpu.dot_dimension_numbers<[1], [1], [0], [0], [0, 0, 1, 0], [], []>} : vector<8x64xbf16>, vector<8x64xbf16>, vector<8x8xf32> -> vector<8x8xf32>
    %cst_94 = arith.constant 1.250000e-01 : f32
    %247 = vector.broadcast %cst_94 : f32 to vector<8x8xf32>
    %248 = arith.mulf %246, %247 : vector<8x8xf32>
    %249 = vector.broadcast %27 : vector<1x8xf32> to vector<8x8xf32>
    %250 = arith.addf %248, %249 : vector<8x8xf32>
    %cst_95 = arith.constant dense<0xFF800000> : vector<8xf32>
    %251 = vector.multi_reduction <maximumf>, %250, %cst_95 [1] : vector<8x8xf32> to vector<8xf32>
    %252 = vector.shape_cast %251 : vector<8xf32> to vector<8x1xf32>
    %253 = vector.broadcast %252 : vector<8x1xf32> to vector<8x8xf32>
    %254 = arith.subf %250, %253 : vector<8x8xf32>
    %255 = math.exp %254 : vector<8x8xf32>
    %cst_96 = arith.constant dense<0.000000e+00> : vector<8xf32>
    %256 = vector.multi_reduction <add>, %255, %cst_96 [1] : vector<8x8xf32> to vector<8xf32>
    %257 = vector.shape_cast %256 : vector<8xf32> to vector<8x1xf32>
    %258 = tpu.reciprocal %257 {approx = true} : vector<8x1xf32> -> vector<8x1xf32>
    %259 = vector.broadcast %258 : vector<8x1xf32> to vector<8x8xf32>
    %260 = arith.mulf %255, %259 : vector<8x8xf32>
    %261 = arith.truncf %243 : vector<8x64xf32> to vector<8x64xbf16>
    %262 = arith.truncf %260 : vector<8x8xf32> to vector<8x8xbf16>
    %cst_97 = arith.constant dense<0.000000e+00> : vector<8x64xf32>
    %263 = tpu.matmul %262, %261, %cst_97 {dimension_numbers = #tpu.dot_dimension_numbers<[1], [0], [0], [1], [0, 0, 1, 1], [], []>} : vector<8x8xbf16>, vector<8x64xbf16>, vector<8x64xf32> -> vector<8x64xf32>
    %264 = vector.extract_strided_slice %238 {offsets = [0, 64], sizes = [8, 64], strides = [1, 1]} : vector<16x128xf32> to vector<8x64xf32>
    %265 = vector.extract_strided_slice %239 {offsets = [0, 64], sizes = [8, 64], strides = [1, 1]} : vector<16x128xf32> to vector<8x64xf32>
    %266 = vector.extract_strided_slice %240 {offsets = [0, 64], sizes = [8, 64], strides = [1, 1]} : vector<16x128xf32> to vector<8x64xf32>
    %267 = arith.truncf %264 : vector<8x64xf32> to vector<8x64xbf16>
    %268 = arith.truncf %265 : vector<8x64xf32> to vector<8x64xbf16>
    %cst_98 = arith.constant dense<0.000000e+00> : vector<8x8xf32>
    %269 = tpu.matmul %267, %268, %cst_98 {dimension_numbers = #tpu.dot_dimension_numbers<[1], [1], [0], [0], [0, 0, 1, 0], [], []>} : vector<8x64xbf16>, vector<8x64xbf16>, vector<8x8xf32> -> vector<8x8xf32>
    %cst_99 = arith.constant 1.250000e-01 : f32
    %270 = vector.broadcast %cst_99 : f32 to vector<8x8xf32>
    %271 = arith.mulf %269, %270 : vector<8x8xf32>
    %272 = vector.broadcast %27 : vector<1x8xf32> to vector<8x8xf32>
    %273 = arith.addf %271, %272 : vector<8x8xf32>
    %cst_100 = arith.constant dense<0xFF800000> : vector<8xf32>
    %274 = vector.multi_reduction <maximumf>, %273, %cst_100 [1] : vector<8x8xf32> to vector<8xf32>
    %275 = vector.shape_cast %274 : vector<8xf32> to vector<8x1xf32>
    %276 = vector.broadcast %275 : vector<8x1xf32> to vector<8x8xf32>
    %277 = arith.subf %273, %276 : vector<8x8xf32>
    %278 = math.exp %277 : vector<8x8xf32>
    %cst_101 = arith.constant dense<0.000000e+00> : vector<8xf32>
    %279 = vector.multi_reduction <add>, %278, %cst_101 [1] : vector<8x8xf32> to vector<8xf32>
    %280 = vector.shape_cast %279 : vector<8xf32> to vector<8x1xf32>
    %281 = tpu.reciprocal %280 {approx = true} : vector<8x1xf32> -> vector<8x1xf32>
    %282 = vector.broadcast %281 : vector<8x1xf32> to vector<8x8xf32>
    %283 = arith.mulf %278, %282 : vector<8x8xf32>
    %284 = arith.truncf %266 : vector<8x64xf32> to vector<8x64xbf16>
    %285 = arith.truncf %283 : vector<8x8xf32> to vector<8x8xbf16>
    %cst_102 = arith.constant dense<0.000000e+00> : vector<8x64xf32>
    %286 = tpu.matmul %285, %284, %cst_102 {dimension_numbers = #tpu.dot_dimension_numbers<[1], [0], [0], [1], [0, 0, 1, 1], [], []>} : vector<8x8xbf16>, vector<8x64xbf16>, vector<8x64xf32> -> vector<8x64xf32>
    %287 = tpu.concatenate %263, %286 in 1 : vector<8x64xf32>, vector<8x64xf32> -> vector<8x128xf32>
    %288 = vector.extract_strided_slice %238 {offsets = [8, 0], sizes = [8, 64], strides = [1, 1]} : vector<16x128xf32> to vector<8x64xf32>
    %289 = vector.extract_strided_slice %239 {offsets = [8, 0], sizes = [8, 64], strides = [1, 1]} : vector<16x128xf32> to vector<8x64xf32>
    %290 = vector.extract_strided_slice %240 {offsets = [8, 0], sizes = [8, 64], strides = [1, 1]} : vector<16x128xf32> to vector<8x64xf32>
    %291 = arith.truncf %288 : vector<8x64xf32> to vector<8x64xbf16>
    %292 = arith.truncf %289 : vector<8x64xf32> to vector<8x64xbf16>
    %cst_103 = arith.constant dense<0.000000e+00> : vector<8x8xf32>
    %293 = tpu.matmul %291, %292, %cst_103 {dimension_numbers = #tpu.dot_dimension_numbers<[1], [1], [0], [0], [0, 0, 1, 0], [], []>} : vector<8x64xbf16>, vector<8x64xbf16>, vector<8x8xf32> -> vector<8x8xf32>
    %cst_104 = arith.constant 1.250000e-01 : f32
    %294 = vector.broadcast %cst_104 : f32 to vector<8x8xf32>
    %295 = arith.mulf %293, %294 : vector<8x8xf32>
    %296 = vector.broadcast %28 : vector<1x8xf32> to vector<8x8xf32>
    %297 = arith.addf %295, %296 : vector<8x8xf32>
    %cst_105 = arith.constant dense<0xFF800000> : vector<8xf32>
    %298 = vector.multi_reduction <maximumf>, %297, %cst_105 [1] : vector<8x8xf32> to vector<8xf32>
    %299 = vector.shape_cast %298 : vector<8xf32> to vector<8x1xf32>
    %300 = vector.broadcast %299 : vector<8x1xf32> to vector<8x8xf32>
    %301 = arith.subf %297, %300 : vector<8x8xf32>
    %302 = math.exp %301 : vector<8x8xf32>
    %cst_106 = arith.constant dense<0.000000e+00> : vector<8xf32>
    %303 = vector.multi_reduction <add>, %302, %cst_106 [1] : vector<8x8xf32> to vector<8xf32>
    %304 = vector.shape_cast %303 : vector<8xf32> to vector<8x1xf32>
    %305 = tpu.reciprocal %304 {approx = true} : vector<8x1xf32> -> vector<8x1xf32>
    %306 = vector.broadcast %305 : vector<8x1xf32> to vector<8x8xf32>
    %307 = arith.mulf %302, %306 : vector<8x8xf32>
    %308 = arith.truncf %290 : vector<8x64xf32> to vector<8x64xbf16>
    %309 = arith.truncf %307 : vector<8x8xf32> to vector<8x8xbf16>
    %cst_107 = arith.constant dense<0.000000e+00> : vector<8x64xf32>
    %310 = tpu.matmul %309, %308, %cst_107 {dimension_numbers = #tpu.dot_dimension_numbers<[1], [0], [0], [1], [0, 0, 1, 1], [], []>} : vector<8x8xbf16>, vector<8x64xbf16>, vector<8x64xf32> -> vector<8x64xf32>
    %311 = vector.extract_strided_slice %238 {offsets = [8, 64], sizes = [8, 64], strides = [1, 1]} : vector<16x128xf32> to vector<8x64xf32>
    %312 = vector.extract_strided_slice %239 {offsets = [8, 64], sizes = [8, 64], strides = [1, 1]} : vector<16x128xf32> to vector<8x64xf32>
    %313 = vector.extract_strided_slice %240 {offsets = [8, 64], sizes = [8, 64], strides = [1, 1]} : vector<16x128xf32> to vector<8x64xf32>
    %314 = arith.truncf %311 : vector<8x64xf32> to vector<8x64xbf16>
    %315 = arith.truncf %312 : vector<8x64xf32> to vector<8x64xbf16>
    %cst_108 = arith.constant dense<0.000000e+00> : vector<8x8xf32>
    %316 = tpu.matmul %314, %315, %cst_108 {dimension_numbers = #tpu.dot_dimension_numbers<[1], [1], [0], [0], [0, 0, 1, 0], [], []>} : vector<8x64xbf16>, vector<8x64xbf16>, vector<8x8xf32> -> vector<8x8xf32>
    %cst_109 = arith.constant 1.250000e-01 : f32
    %317 = vector.broadcast %cst_109 : f32 to vector<8x8xf32>
    %318 = arith.mulf %316, %317 : vector<8x8xf32>
    %319 = vector.broadcast %28 : vector<1x8xf32> to vector<8x8xf32>
    %320 = arith.addf %318, %319 : vector<8x8xf32>
    %cst_110 = arith.constant dense<0xFF800000> : vector<8xf32>
    %321 = vector.multi_reduction <maximumf>, %320, %cst_110 [1] : vector<8x8xf32> to vector<8xf32>
    %322 = vector.shape_cast %321 : vector<8xf32> to vector<8x1xf32>
    %323 = vector.broadcast %322 : vector<8x1xf32> to vector<8x8xf32>
    %324 = arith.subf %320, %323 : vector<8x8xf32>
    %325 = math.exp %324 : vector<8x8xf32>
    %cst_111 = arith.constant dense<0.000000e+00> : vector<8xf32>
    %326 = vector.multi_reduction <add>, %325, %cst_111 [1] : vector<8x8xf32> to vector<8xf32>
    %327 = vector.shape_cast %326 : vector<8xf32> to vector<8x1xf32>
    %328 = tpu.reciprocal %327 {approx = true} : vector<8x1xf32> -> vector<8x1xf32>
    %329 = vector.broadcast %328 : vector<8x1xf32> to vector<8x8xf32>
    %330 = arith.mulf %325, %329 : vector<8x8xf32>
    %331 = arith.truncf %313 : vector<8x64xf32> to vector<8x64xbf16>
    %332 = arith.truncf %330 : vector<8x8xf32> to vector<8x8xbf16>
    %cst_112 = arith.constant dense<0.000000e+00> : vector<8x64xf32>
    %333 = tpu.matmul %332, %331, %cst_112 {dimension_numbers = #tpu.dot_dimension_numbers<[1], [0], [0], [1], [0, 0, 1, 1], [], []>} : vector<8x8xbf16>, vector<8x64xbf16>, vector<8x64xf32> -> vector<8x64xf32>
    %334 = tpu.concatenate %310, %333 in 1 : vector<8x64xf32>, vector<8x64xf32> -> vector<8x128xf32>
    %335 = tpu.concatenate %287, %334 in 0 : vector<8x128xf32>, vector<8x128xf32> -> vector<16x128xf32>
    %c1_113 = arith.constant 1 : index
    %c0_114 = arith.constant 0 : index
    %c0_115 = arith.constant 0 : index
    %336 = vector.load %arg6[%c1_113, %c0_114, %c0_115] : memref<2x128x128xbf16, #tpu.memory_space<vmem>>, vector<1x128x128xbf16>
    %337 = vector.shape_cast %336 : vector<1x128x128xbf16> to vector<128x128xbf16>
    %338 = arith.truncf %335 : vector<16x128xf32> to vector<16x128xbf16>
    %cst_116 = arith.constant dense<0.000000e+00> : vector<16x128xf32>
    %339 = tpu.matmul %338, %337, %cst_116 {dimension_numbers = #tpu.dot_dimension_numbers<[1], [0], [0], [1], [0, 0, 1, 1], [], []>} : vector<16x128xbf16>, vector<128x128xbf16>, vector<16x128xf32> -> vector<16x128xf32>
    %c1_117 = arith.constant 1 : index
    %c0_118 = arith.constant 0 : index
    %c0_119 = arith.constant 0 : index
    %340 = vector.load %arg7[%c1_117, %c0_118, %c0_119] : memref<2x1x128xf32, #tpu.memory_space<vmem>>, vector<1x1x128xf32>
    %341 = vector.shape_cast %340 : vector<1x1x128xf32> to vector<1x128xf32>
    %342 = vector.broadcast %341 : vector<1x128xf32> to vector<16x128xf32>
    %343 = arith.addf %339, %342 : vector<16x128xf32>
    %344 = arith.addf %229, %343 : vector<16x128xf32>
    %c1_120 = arith.constant 1 : index
    %c0_121 = arith.constant 0 : index
    %c0_122 = arith.constant 0 : index
    %345 = vector.load %arg8[%c1_120, %c0_121, %c0_122] : memref<2x1x128xf32, #tpu.memory_space<vmem>>, vector<1x1x128xf32>
    %346 = vector.shape_cast %345 : vector<1x1x128xf32> to vector<1x128xf32>
    %c1_123 = arith.constant 1 : index
    %c0_124 = arith.constant 0 : index
    %c0_125 = arith.constant 0 : index
    %347 = vector.load %arg9[%c1_123, %c0_124, %c0_125] : memref<2x1x128xf32, #tpu.memory_space<vmem>>, vector<1x1x128xf32>
    %348 = vector.shape_cast %347 : vector<1x1x128xf32> to vector<1x128xf32>
    %cst_126 = arith.constant dense<0.000000e+00> : vector<16xf32>
    %349 = vector.multi_reduction <add>, %344, %cst_126 [1] : vector<16x128xf32> to vector<16xf32>
    %350 = vector.shape_cast %349 : vector<16xf32> to vector<16x1xf32>
    %cst_127 = arith.constant 1.280000e+02 : f32
    %351 = vector.broadcast %cst_127 : f32 to vector<16x1xf32>
    %352 = arith.divf %350, %351 : vector<16x1xf32>
    %353 = vector.broadcast %352 : vector<16x1xf32> to vector<16x128xf32>
    %354 = arith.subf %344, %353 : vector<16x128xf32>
    %355 = vector.broadcast %352 : vector<16x1xf32> to vector<16x128xf32>
    %356 = arith.subf %344, %355 : vector<16x128xf32>
    %357 = arith.mulf %354, %356 : vector<16x128xf32>
    %cst_128 = arith.constant dense<0.000000e+00> : vector<16xf32>
    %358 = vector.multi_reduction <add>, %357, %cst_128 [1] : vector<16x128xf32> to vector<16xf32>
    %359 = vector.shape_cast %358 : vector<16xf32> to vector<16x1xf32>
    %cst_129 = arith.constant 1.280000e+02 : f32
    %360 = vector.broadcast %cst_129 : f32 to vector<16x1xf32>
    %361 = arith.divf %359, %360 : vector<16x1xf32>
    %362 = vector.broadcast %352 : vector<16x1xf32> to vector<16x128xf32>
    %363 = arith.subf %344, %362 : vector<16x128xf32>
    %cst_130 = arith.constant 9.99999996E-13 : f32
    %364 = vector.broadcast %cst_130 : f32 to vector<16x1xf32>
    %365 = arith.addf %361, %364 : vector<16x1xf32>
    %366 = math.rsqrt %365 : vector<16x1xf32>
    %367 = vector.broadcast %366 : vector<16x1xf32> to vector<16x128xf32>
    %368 = arith.mulf %363, %367 : vector<16x128xf32>
    %369 = vector.broadcast %346 : vector<1x128xf32> to vector<16x128xf32>
    %370 = arith.mulf %368, %369 : vector<16x128xf32>
    %371 = vector.broadcast %348 : vector<1x128xf32> to vector<16x128xf32>
    %372 = arith.addf %370, %371 : vector<16x128xf32>
    %c1_131 = arith.constant 1 : index
    %c0_132 = arith.constant 0 : index
    %c0_133 = arith.constant 0 : index
    %373 = vector.load %arg10[%c1_131, %c0_132, %c0_133] : memref<2x128x256xbf16, #tpu.memory_space<vmem>>, vector<1x128x256xbf16>
    %374 = vector.shape_cast %373 : vector<1x128x256xbf16> to vector<128x256xbf16>
    %375 = arith.truncf %372 : vector<16x128xf32> to vector<16x128xbf16>
    %cst_134 = arith.constant dense<0.000000e+00> : vector<16x256xf32>
    %376 = tpu.matmul %375, %374, %cst_134 {dimension_numbers = #tpu.dot_dimension_numbers<[1], [0], [0], [1], [0, 0, 1, 1], [], []>} : vector<16x128xbf16>, vector<128x256xbf16>, vector<16x256xf32> -> vector<16x256xf32>
    %c1_135 = arith.constant 1 : index
    %c0_136 = arith.constant 0 : index
    %c0_137 = arith.constant 0 : index
    %377 = vector.load %arg11[%c1_135, %c0_136, %c0_137] : memref<2x1x256xf32, #tpu.memory_space<vmem>>, vector<1x1x256xf32>
    %378 = vector.shape_cast %377 : vector<1x1x256xf32> to vector<1x256xf32>
    %379 = vector.broadcast %378 : vector<1x256xf32> to vector<16x256xf32>
    %380 = arith.addf %376, %379 : vector<16x256xf32>
    %cst_138 = arith.constant 5.000000e-01 : f32
    %381 = vector.broadcast %cst_138 : f32 to vector<16x256xf32>
    %382 = arith.mulf %381, %380 : vector<16x256xf32>
    %cst_139 = arith.constant 4.471500e-02 : f32
    %383 = vector.broadcast %cst_139 : f32 to vector<16x256xf32>
    %384 = arith.mulf %383, %380 : vector<16x256xf32>
    %385 = arith.mulf %384, %380 : vector<16x256xf32>
    %386 = arith.mulf %385, %380 : vector<16x256xf32>
    %387 = arith.addf %380, %386 : vector<16x256xf32>
    %cst_140 = arith.constant 0.797884583 : f32
    %388 = vector.broadcast %cst_140 : f32 to vector<16x256xf32>
    %389 = arith.mulf %388, %387 : vector<16x256xf32>
    %390 = math.tanh %389 : vector<16x256xf32>
    %cst_141 = arith.constant 1.000000e+00 : f32
    %391 = vector.broadcast %cst_141 : f32 to vector<16x256xf32>
    %392 = arith.addf %391, %390 : vector<16x256xf32>
    %393 = arith.mulf %382, %392 : vector<16x256xf32>
    %c1_142 = arith.constant 1 : index
    %c0_143 = arith.constant 0 : index
    %c0_144 = arith.constant 0 : index
    %394 = vector.load %arg12[%c1_142, %c0_143, %c0_144] : memref<2x256x128xbf16, #tpu.memory_space<vmem>>, vector<1x256x128xbf16>
    %395 = vector.shape_cast %394 : vector<1x256x128xbf16> to vector<256x128xbf16>
    %396 = arith.truncf %393 : vector<16x256xf32> to vector<16x256xbf16>
    %cst_145 = arith.constant dense<0.000000e+00> : vector<16x128xf32>
    %397 = tpu.matmul %396, %395, %cst_145 {dimension_numbers = #tpu.dot_dimension_numbers<[1], [0], [0], [1], [0, 0, 1, 1], [], []>} : vector<16x256xbf16>, vector<256x128xbf16>, vector<16x128xf32> -> vector<16x128xf32>
    %c1_146 = arith.constant 1 : index
    %c0_147 = arith.constant 0 : index
    %c0_148 = arith.constant 0 : index
    %398 = vector.load %arg13[%c1_146, %c0_147, %c0_148] : memref<2x1x128xf32, #tpu.memory_space<vmem>>, vector<1x1x128xf32>
    %399 = vector.shape_cast %398 : vector<1x1x128xf32> to vector<1x128xf32>
    %400 = vector.broadcast %399 : vector<1x128xf32> to vector<16x128xf32>
    %401 = arith.addf %397, %400 : vector<16x128xf32>
    %402 = arith.addf %372, %401 : vector<16x128xf32>
    %c1_149 = arith.constant 1 : index
    %c0_150 = arith.constant 0 : index
    %c0_151 = arith.constant 0 : index
    %403 = vector.load %arg14[%c1_149, %c0_150, %c0_151] : memref<2x1x128xf32, #tpu.memory_space<vmem>>, vector<1x1x128xf32>
    %404 = vector.shape_cast %403 : vector<1x1x128xf32> to vector<1x128xf32>
    %c1_152 = arith.constant 1 : index
    %c0_153 = arith.constant 0 : index
    %c0_154 = arith.constant 0 : index
    %405 = vector.load %arg15[%c1_152, %c0_153, %c0_154] : memref<2x1x128xf32, #tpu.memory_space<vmem>>, vector<1x1x128xf32>
    %406 = vector.shape_cast %405 : vector<1x1x128xf32> to vector<1x128xf32>
    %cst_155 = arith.constant dense<0.000000e+00> : vector<16xf32>
    %407 = vector.multi_reduction <add>, %402, %cst_155 [1] : vector<16x128xf32> to vector<16xf32>
    %408 = vector.shape_cast %407 : vector<16xf32> to vector<16x1xf32>
    %cst_156 = arith.constant 1.280000e+02 : f32
    %409 = vector.broadcast %cst_156 : f32 to vector<16x1xf32>
    %410 = arith.divf %408, %409 : vector<16x1xf32>
    %411 = vector.broadcast %410 : vector<16x1xf32> to vector<16x128xf32>
    %412 = arith.subf %402, %411 : vector<16x128xf32>
    %413 = vector.broadcast %410 : vector<16x1xf32> to vector<16x128xf32>
    %414 = arith.subf %402, %413 : vector<16x128xf32>
    %415 = arith.mulf %412, %414 : vector<16x128xf32>
    %cst_157 = arith.constant dense<0.000000e+00> : vector<16xf32>
    %416 = vector.multi_reduction <add>, %415, %cst_157 [1] : vector<16x128xf32> to vector<16xf32>
    %417 = vector.shape_cast %416 : vector<16xf32> to vector<16x1xf32>
    %cst_158 = arith.constant 1.280000e+02 : f32
    %418 = vector.broadcast %cst_158 : f32 to vector<16x1xf32>
    %419 = arith.divf %417, %418 : vector<16x1xf32>
    %420 = vector.broadcast %410 : vector<16x1xf32> to vector<16x128xf32>
    %421 = arith.subf %402, %420 : vector<16x128xf32>
    %cst_159 = arith.constant 9.99999996E-13 : f32
    %422 = vector.broadcast %cst_159 : f32 to vector<16x1xf32>
    %423 = arith.addf %419, %422 : vector<16x1xf32>
    %424 = math.rsqrt %423 : vector<16x1xf32>
    %425 = vector.broadcast %424 : vector<16x1xf32> to vector<16x128xf32>
    %426 = arith.mulf %421, %425 : vector<16x128xf32>
    %427 = vector.broadcast %404 : vector<1x128xf32> to vector<16x128xf32>
    %428 = arith.mulf %426, %427 : vector<16x128xf32>
    %429 = vector.broadcast %406 : vector<1x128xf32> to vector<16x128xf32>
    %430 = arith.addf %428, %429 : vector<16x128xf32>
    %431 = vector.extract_strided_slice %430 {offsets = [0, 0], sizes = [1, 128], strides = [1, 1]} : vector<16x128xf32> to vector<1x128xf32>
    %432 = vector.extract_strided_slice %430 {offsets = [8, 0], sizes = [1, 128], strides = [1, 1]} : vector<16x128xf32> to vector<1x128xf32>
    %433 = tpu.concatenate %431, %432 in 0 : vector<1x128xf32>, vector<1x128xf32> -> vector<2x128xf32>
    %c0_160 = arith.constant 0 : index
    %c0_161 = arith.constant 0 : index
    %434 = vector.load %arg16[%c0_160, %c0_161] : memref<128x128xbf16, #tpu.memory_space<vmem>>, vector<128x128xbf16>
    %435 = arith.truncf %433 : vector<2x128xf32> to vector<2x128xbf16>
    %cst_162 = arith.constant dense<0.000000e+00> : vector<2x128xf32>
    %436 = tpu.matmul %435, %434, %cst_162 {dimension_numbers = #tpu.dot_dimension_numbers<[1], [0], [0], [1], [0, 0, 1, 1], [], []>} : vector<2x128xbf16>, vector<128x128xbf16>, vector<2x128xf32> -> vector<2x128xf32>
    %c0_163 = arith.constant 0 : index
    %c0_164 = arith.constant 0 : index
    %437 = vector.load %arg17[%c0_163, %c0_164] : memref<1x128xf32, #tpu.memory_space<vmem>>, vector<1x128xf32>
    %438 = vector.broadcast %437 : vector<1x128xf32> to vector<2x128xf32>
    %439 = arith.addf %436, %438 : vector<2x128xf32>
    %440 = math.tanh %439 : vector<2x128xf32>
    %c0_165 = arith.constant 0 : index
    %c0_166 = arith.constant 0 : index
    %441 = vector.load %arg18[%c0_165, %c0_166] : memref<128x128xbf16, #tpu.memory_space<vmem>>, vector<128x128xbf16>
    %442 = arith.truncf %440 : vector<2x128xf32> to vector<2x128xbf16>
    %cst_167 = arith.constant dense<0.000000e+00> : vector<2x128xf32>
    %443 = tpu.matmul %442, %441, %cst_167 {dimension_numbers = #tpu.dot_dimension_numbers<[1], [0], [0], [1], [0, 0, 1, 1], [], []>} : vector<2x128xbf16>, vector<128x128xbf16>, vector<2x128xf32> -> vector<2x128xf32>
    %c0_168 = arith.constant 0 : index
    %c0_169 = arith.constant 0 : index
    %444 = vector.load %arg19[%c0_168, %c0_169] : memref<1x128xf32, #tpu.memory_space<vmem>>, vector<1x128xf32>
    %445 = vector.broadcast %444 : vector<1x128xf32> to vector<2x128xf32>
    %446 = arith.addf %443, %445 : vector<2x128xf32>
    %c0_170 = arith.constant 0 : index
    %c0_171 = arith.constant 0 : index
    %447 = vector.load %arg20[%c0_170, %c0_171] : memref<2x128xf32, #tpu.memory_space<vmem>>, vector<2x128xf32>
    tpu.vector_store %arg20[%c0_170, %c0_171], %446 {strides = array<i32>} : memref<2x128xf32, #tpu.memory_space<vmem>>, vector<2x128xf32>,
    return
  }
}

</mosaic_0001>

<bundles_post_ra>
// kernel: new_classifier_forward.1
= control target key start
LH: loop header
LB: loop body
LE: loop exit
PB: predicated region body
PF: predicated region fallthrough
CT: control target
= control target key end

     0   :  { %s4762_s0 = inlined_call_operand.vmem [shape: f32[16,128], index: 0, kind: input, shape index: {}]   ;;  %s4763_s1 = inlined_call_operand.vmem [shape: f32[2,8], index: 1, kind: input, shape index: {}]   ;;  %s4764_s2 = inlined_call_operand.vmem [shape: f32[1,128], index: 2, kind: input, shape index: {}]   ;;  %s4765_s3 = inlined_call_operand.vmem [shape: f32[1,128], index: 3, kind: input, shape index: {}]   ;;  %s4766_s4 = inlined_call_operand.vmem [shape: bf16[2,128,384], index: 4, kind: input, shape index: {}]   ;;  %s4767_s5 = inlined_call_operand.vmem [shape: f32[2,1,384], index: 5, kind: input, shape index: {}]   ;;  %s4768_s6 = inlined_call_operand.vmem [shape: bf16[2,128,128], index: 6, kind: input, shape index: {}]   ;;  %s4769_s7 = inlined_call_operand.vmem [shape: f32[2,1,128], index: 7, kind: input, shape index: {}]   ;;  %s4770_s8 = inlined_call_operand.vmem [shape: f32[2,1,128], index: 8, kind: input, shape index: {}]   ;;  %s4771_s9 = inlined_call_operand.vmem [shape: f32[2,1,128], index: 9, kind: input, shape index: {}]   ;;  %s4772_s10 = inlined_call_operand.vmem [shape: bf16[2,128,256], index: 10, kind: input, shape index: {}]   ;;  %s4773_s11 = inlined_call_operand.vmem [shape: f32[2,1,256], index: 11, kind: input, shape index: {}]   ;;  %s4774_s12 = inlined_call_operand.vmem [shape: bf16[2,256,128], index: 12, kind: input, shape index: {}]   ;;  %s4775_s13 = inlined_call_operand.vmem [shape: f32[2,1,128], index: 13, kind: input, shape index: {}]   ;;  %s4776_s14 = inlined_call_operand.vmem [shape: f32[2,1,128], index: 14, kind: input, shape index: {}]   ;;  %s4777_s15 = inlined_call_operand.vmem [shape: f32[2,1,128], index: 15, kind: input, shape index: {}]   ;;  %s4778_s16 = inlined_call_operand.vmem [shape: bf16[128,128], index: 16, kind: input, shape index: {}]   ;;  %s4779_s17 = inlined_call_operand.vmem [shape: f32[1,128], index: 17, kind: input, shape index: {}]   ;;  %s4780_s18 = inlined_call_operand.vmem [shape: bf16[128,128], index: 18, kind: input, shape index: {}]   ;;  %s4781_s19 = inlined_call_operand.vmem [shape: f32[1,128], index: 19, kind: input, shape index: {}]   ;;  %s4782_s20 = inlined_call_operand.hbm [shape: f32[2,128], index: 20, kind: output, shape index: {}]  }
   0x1   :  { %4786 = sst [smem:[#allocation5_spill]] %s4762_s0 }
   0x2   :  { %4787 = sst [smem:[#allocation6_spill]] %s4763_s1 }
   0x3   :  { %4788 = sst [smem:[#allocation7_spill]] %s4764_s2 }
   0x4   :  { %4789 = sst [smem:[#allocation8_spill]] %s4765_s3 }
   0x5   :  { %4790 = sst [smem:[#allocation9_spill]] %s4766_s4 }
   0x6   :  { %s4791_s23 = sld [smem:[#allocation5_spill]]  ;;  %v3858_v4 = vmov 0.0  }
   0x7   :  { %s4792_s26 = sld [smem:[#allocation9_spill]]  ;;  %3358 = vmatprep.subr.bf16.mxu1 %v3858_v4 }
   0xc   :  { %v67_v0 = vld [vmem:[%s4791_s23] sm:$0xff]  ;;  %v68_v1 = vld [vmem:[%s4791_s23 + $0x8] sm:$0xff] }
   0xd   :  { %71 = vadd.xlane.f32.xlu0 %v67_v0  ;;  %v3589_v2 = vld [vmem:[%s4792_s26 + $0xac] ss:$12 sps:$4 sm:$0xff]   ;;  %v3591_v3 = vld [vmem:[%s4792_s26 + $0xa8] ss:$12 sps:$4 sm:$0xff]   ;;  %v3592_v5 = vld [vmem:[%s4792_s26 + $0xb0] ss:$12 sps:$4 sm:$0xff]  }
   0xe   :  { %290 = vmatprep.subr.bf16.mxu0 %v3589_v2  ;;  %3359 = vmatpush3.bf16.msra.mxu1 %v3592_v5 }
   0xf   :  { %291 = vmatpush1.bf16.msra.mxu0 %v3591_v3  ;;  %3360 = vmatprep.subr.bf16.mxu1 %v3858_v4 }
  0x11   :  { %73 = vadd.xlane.f32.xlu0 %v68_v1 }
  0x12   :  { %25 = vsyncpa [#allocation3], 0  ;;  %v3593_v14 = vld [vmem:[%s4792_s26 + $0x94] ss:$12 sps:$4 sm:$0xff]   ;;  %v3595_v15 = vld [vmem:[%s4792_s26 + $0x90] ss:$12 sps:$4 sm:$0xff]   ;;  %v147_v53 = vlaneseq }
  0x13   :  { %v3596_v16 = vld [vmem:[%s4792_s26 + $0x98] ss:$12 sps:$4 sm:$0xff]   ;;  %292 = vmatprep.subr.bf16.mxu0 %v3593_v14  ;;  %v3597_v17 = vld [vmem:[%s4792_s26 + $0x7c] ss:$12 sps:$4 sm:$0xff]   ;;  %v3600_v19 = vld [vmem:[%s4792_s26 + $0x80] ss:$12 sps:$4 sm:$0xff]  }
  0x14   :  { %293 = vmatpush1.bf16.msra.mxu0 %v3595_v15  ;;  %3361 = vmatpush3.bf16.msra.mxu1 %v3596_v16  ;;  %v3599_v18 = vld [vmem:[%s4792_s26 + $0x78] ss:$12 sps:$4 sm:$0xff]   ;;  %v3603_v21 = vld [vmem:[%s4792_s26 + $0x60] ss:$12 sps:$4 sm:$0xff]   ;;  %v3604_v22 = vld [vmem:[%s4792_s26 + $0x68] ss:$12 sps:$4 sm:$0xff]  }
  0x15   :  { %3362 = vmatprep.subr.bf16.mxu1 %v3858_v4  ;;  %294 = vmatprep.subr.bf16.mxu0 %v3597_v17  ;;  %v3601_v20 = vld [vmem:[%s4792_s26 + $0x64] ss:$12 sps:$4 sm:$0xff]   ;;  %v3605_v23 = vld [vmem:[%s4792_s26 + $0x4c] ss:$12 sps:$4 sm:$0xff]   ;;  %v3607_v24 = vld [vmem:[%s4792_s26 + $0x48] ss:$12 sps:$4 sm:$0xff]  }
  0x16   :  { %v3608_v25 = vld [vmem:[%s4792_s26 + $0x50] ss:$12 sps:$4 sm:$0xff]   ;;  %v3609_v26 = vld [vmem:[%s4792_s26 + $0x34] ss:$12 sps:$4 sm:$0xff]   ;;  %v3859_v27 = vmov 0   ;;  %vm3860_vm0 = vmmov 0  }
  0x17   :  { %322 = vmatprep.mubr.bf16.mxu0 %v3859_v27  ;;  %3374 = vmatprep.mubr.msk.bf16.mxu1 %vm3860_vm0, %v3858_v4  ;;  %v3611_v28 = vld [vmem:[%s4792_s26 + $0x30] ss:$12 sps:$4 sm:$0xff]   ;;  %v3612_v29 = vld [vmem:[%s4792_s26 + $0x38] ss:$12 sps:$4 sm:$0xff]   ;;  %v3616_v32 = vld [vmem:[%s4792_s26 + $0x20] ss:$12 sps:$4 sm:$0xff]  }
  0x18   :  { %295 = vmatpush1.bf16.msra.mxu0 %v3599_v18  ;;  %3363 = vmatpush3.bf16.msra.mxu1 %v3600_v19  ;;  %v3613_v30 = vld [vmem:[%s4792_s26 + $0x1c] ss:$12 sps:$4 sm:$0xff]   ;;  %v3615_v31 = vld [vmem:[%s4792_s26 + $0x18] ss:$12 sps:$4 sm:$0xff]   ;;  %v3619_v34 = vld [vmem:[%s4792_s26] ss:$12 sps:$4 sm:$0xff]  }
  0x19   :  { %3364 = vmatprep.subr.bf16.mxu1 %v3858_v4  ;;  %296 = vmatprep.subr.bf16.mxu0 %v3601_v20  ;;  %v3617_v33 = vld [vmem:[%s4792_s26 + $0x4] ss:$12 sps:$4 sm:$0xff]   ;;  %v3620_v35 = vld [vmem:[%s4792_s26 + $0x8] ss:$12 sps:$4 sm:$0xff]   ;;  %s4793_s21 = sld [smem:[#allocation7_spill]]  ;;  %v4085_v54 = vshrl.u32 %v147_v53, 7 }
  0x1a   :  { %s4794_s23 = sld [smem:[#allocation8_spill]]  ;;  %v145_v56 = vld [vmem:[%s4767_s5] sm:$0x7]  ;;  %vm376_vm1 = vcmask 523264   ;;  %vm446_vm2 = vcmask 1043456   ;;  %vm429_vm3 = vcmask 64512  }
  0x1b   :  { %v4088_v55 = vsub.s32 1, %v4085_v54  ;;  %v157_v57 = vsub.s32 2, %v4085_v54  ;;  %v4096_v61 = vsub.s32 0, %v4085_v54  ;;  %s4795_s27 = sld [smem:[#allocation6_spill]]  ;;  %s3861_s28 = smov 64   ;;  %vm2704_vm4 = vcmask 1040384  }
  0x1c   :  { %297 = vmatpush1.bf16.msra.mxu0 %v3603_v21  ;;  %3365 = vmatpush3.bf16.msra.mxu1 %v3604_v22 }
  0x1d   :  { %298 = vmatprep.subr.bf16.mxu0 %v3605_v23  ;;  %3366 = vmatprep.subr.bf16.mxu1 %v3858_v4  ;;  %v154_v58 = vrot.slane %v145_v56, %v4088_v55  ;;  %v150_v5 = vrot.slane %v145_v56, %v4096_v61 }
  0x1f   :  { %v2946_v44 = vld [vmem:[%s4793_s21] ss:$0 sm:$0xff] }
  0x20   :  { %299 = vmatpush1.bf16.msra.mxu0 %v3607_v24  ;;  %3367 = vmatpush3.bf16.msra.mxu1 %v3608_v25  ;;  %v2947_v48 = vld [vmem:[%s4794_s23] ss:$0 sm:$0xff] }
  0x21   :  { %300 = vmatprep.subr.bf16.mxu0 %v3609_v26  ;;  %3368 = vmatprep.subr.bf16.mxu1 %v3858_v4  ;;  %v4121_v22 = vld [vmem:[%s4795_s27] ss:$0 sm:$0xff] }
  0x24   :  { %301 = vmatpush1.bf16.msra.mxu0 %v3611_v28  ;;  %3369 = vmatpush3.bf16.msra.mxu1 %v3612_v29 }
  0x25   :  { %302 = vmatprep.subr.bf16.mxu0 %v3613_v30  ;;  %3370 = vmatprep.subr.bf16.mxu1 %v3858_v4 }
  0x28   :  { %303 = vmatpush1.bf16.msra.mxu0 %v3615_v31  ;;  %3371 = vmatpush3.bf16.msra.mxu1 %v3616_v32 }
  0x29   :  { %304 = vmatprep.subr.bf16.mxu0 %v3617_v33  ;;  %3372 = vmatprep.subr.bf16.mxu1 %v3858_v4 }
  0x2c   :  { %305 = vmatpush1.bf16.msra.mxu0 %v3619_v34  ;;  %3373 = vmatpush3.bf16.msra.mxu1 %v3620_v35 }
  0x2d   :  { %3378 = vmatprep.subr.bf16.mxu1 %v3858_v4  ;;  %3402 = vmatprep.subr.bf16.mxu0 %v3858_v4 }
  0x96   :  { %v72_v6 = vpop.xlane.xlu0 %71 }
  0x97   :  { %v76_v7 = vmul.f32 0.0078125, %v72_v6 }
  0x99   :  { %v3985_v8 = vsub.f32 %v67_v0, %v76_v7  ;;  %v158_v0 = vrot.slane %v145_v56, %v157_v57 }
  0x9a   :  { %v74_v9 = vpop.xlane.xlu0 %73 }
  0x9b   :  { %v77_v10 = vmul.f32 0.0078125, %v74_v9  ;;  %v80_v11 = vmul.f32 %v3985_v8, %v3985_v8 }
  0x9d   :  { %v3989_v12 = vsub.f32 %v68_v1, %v77_v10  ;;  %82 = vadd.xlane.f32.xlu1 %v80_v11 }
  0x9f   :  { %v81_v13 = vmul.f32 %v3989_v12, %v3989_v12 }
  0xa1   :  { %84 = vadd.xlane.f32.xlu1 %v81_v13 }
 0x126   :  { %v83_v36 = vpop.xlane.xlu1 %82 }
 0x127   :  { %v86_v37 = vmul.f32 0.0078125, %v83_v36 }
 0x129   :  { %v88_v38 = vadd.f32 1e-12, %v86_v37 }
 0x12a   :  { %v85_v39 = vpop.xlane.xlu1 %84 }
 0x12b   :  { %3765 = vrsqrt.f32 %v88_v38  ;;  %v87_v40 = vmul.f32 0.0078125, %v85_v39 }
 0x12d   :  { %v89_v41 = vadd.f32 1e-12, %v87_v40  ;;  %v4133_v40 = vld [vmem:[%s4795_s27 + $0x1] ss:$0 sm:$0xff] }
 0x12f   :  { %3767 = vrsqrt.f32 %v89_v41 }
 0x138   :  { %v3766_v42 = vpop.eup %3765 }
 0x139   :  { %v92_v43 = vmul.f32 %v3766_v42, %v3985_v8 }
 0x13b   :  { %v100_v47 = vmul.f32 %v2946_v44, %v92_v43 }
 0x13c   :  { %v3768_v45 = vpop.eup %3767 }
 0x13d   :  { %v93_v46 = vmul.f32 %v3768_v45, %v3989_v12  ;;  %v4075_v50 = vadd.f32 %v2947_v48, %v100_v47 }
 0x13f   :  { %v101_v49 = vmul.f32 %v2946_v44, %v93_v46 }
 0x141   :  { %v4077_v51 = vadd.f32 %v2947_v48, %v101_v49 }
 0x143   :  { %v144_v52 = vpack.c.bf16 %v4077_v51, %v4075_v50 }
 0x145   :  { %323 = vmatmul.mubr.bf16.vlgmr.msra.gmra.mxu0 %v144_v52  ;;  %3375 = vmatmul.mubr.bf16.vlgmr.msra.gmra.mxu1 %v144_v52 }
 0x146   :  { %3380 = vmatprep.mubr.msk.bf16.mxu1 %vm3860_vm0, %v3858_v4  ;;  %3404 = vmatprep.mubr.msk.bf16.mxu0 %vm3860_vm0, %v3858_v4 }
 0x205   :  { %v324_v59 = vpop.f32.mrf.mxu0  ;;  %v367_v60 = vpop.f32.mrf.mxu1 }
 0x206   :  { %v368_v10 = vadd.f32 %v367_v60, %v158_v0  ;;  %v325_v13 = vadd.f32 %v324_v59, %v150_v5 }
 0x207   :  { %v326_v62 = vpop.f32.mrf.mxu0  ;;  %v3376_v63 = vpop.f32.mrf.mxu1 }
 0x208   :  { %v327_v1 = vadd.f32 %v326_v62, %v154_v58  ;;  %v4105_v15 = vpack.c.bf16 %v368_v10, %v368_v10  ;;  %v374_v17 = vpack.c.bf16 %v325_v13, %v325_v13 }
 0x209   :  { %v328_v2 = vpop.f32.mrf.mxu0  ;;  %v370_v3 = vpop.f32.mrf.mxu1 }
 0x20a   :  { %v375_v6 = vpack.c.bf16 %v327_v1, %v327_v1  ;;  %v4101_v7 = vadd.f32 %v370_v3, %v158_v0  ;;  %v329_v18 = vadd.f32 %v328_v2, %v150_v5  ;;  %v448_v19 = vsel %vm446_vm2, %v4105_v15, 0 }
 0x20b   :  { %v330_v8 = vpop.f32.mrf.mxu0  ;;  %v3377_v9 = vpop.f32.mrf.mxu1 }
 0x20c   :  { %v381_v11 = vsel %vm376_vm1, %v375_v6, 0  ;;  %v331_v12 = vadd.f32 %v330_v8, %v154_v58  ;;  %v610_v20 = vpack.c.bf16 %v329_v18, %v329_v18 }
 0x20d   :  { %3379 = vmatpush3.bf16.xpose.msra.mxu1 %v381_v11 }
 0x20e   :  { %v611_v14 = vpack.c.bf16 %v331_v12, %v331_v12  ;;  %3384 = vmatprep.subr.bf16.mxu1 %v3858_v4 }
 0x210   :  { %v616_v16 = vsel %vm376_vm1, %v611_v14, 0 }
 0x211   :  { %3403 = vmatpush3.bf16.xpose.msra.mxu0 %v616_v16 }
 0x212   :  { %3414 = vmatprep.subr.bf16.mxu0 %v3858_v4 }
 0x214   :  { %3381 = vmatmul.mubr.msk.bf16.vlgmr.msra.gmra.mxu1 %vm376_vm1, %v374_v17 }
 0x215   :  { %3385 = vmatpush3.bf16.msra.mxu1 %v448_v19  ;;  %3386 = vmatprep.mubr.msk.bf16.mxu1 %vm3860_vm0, %v3858_v4 }
 0x216   :  { %3390 = vmatprep.subr.bf16.mxu1 %v3858_v4 }
 0x218   :  { %3405 = vmatmul.mubr.msk.bf16.vlgmr.msra.gmra.mxu0 %vm376_vm1, %v610_v20 }
 0x219   :  { %3416 = vmatprep.mubr.msk.bf16.mxu0 %vm3860_vm0, %v3858_v4 }
 0x2d4   :  { %v417_v21 = vpop.f32.mrf.mxu1 }
 0x2d5   :  { %v423_v23 = vmul.f32 0.125, %v417_v21 }
 0x2d6   :  { %v3382_v24 = vpop.f32.mrf.mxu1 }
 0x2d7   :  { %v428_v25 = vadd.f32 %v4121_v22, %v423_v23 }
 0x2d8   :  { %v420_v26 = vpop.f32.mrf.mxu1  ;;  %v652_v28 = vpop.f32.mrf.mxu0 }
 0x2d9   :  { %v430_v29 = vsel %vm429_vm3, %v428_v25, -inf  ;;  %v658_v39 = vmul.f32 0.125, %v652_v28 }
 0x2da   :  { %v3406_v30 = vpop.f32.mrf.mxu0  ;;  %431 = vmax.xlane.f32.xlu0 %v430_v29  ;;  %v3383_v31 = vpop.f32.mrf.mxu1 }
 0x2db   :  { %v663_v41 = vadd.f32 %v4133_v40, %v658_v39 }
 0x2dc   :  { %v655_v32 = vpop.f32.mrf.mxu0 }
 0x2dd   :  { %v664_v42 = vsel %vm429_vm3, %v663_v41, -inf }
 0x2de   :  { %v3407_v33 = vpop.f32.mrf.mxu0 }
 0x2df   :  { %v675_v33 = vpack.c.bf16 %v4101_v7, %v4101_v7 }
 0x2f0   :  { %494 = vrot.lane.b32.xlu0 %v375_v6, %s3861_s28 }
 0x363   :  { %v432_v34 = vpop.xlane.xlu0 %431 }
 0x364   :  { %v433_v35 = vsub.f32 %v428_v25, %v432_v34 }
 0x366   :  { %v434_v36 = vmul.f32 1.442695, %v433_v35 }
 0x367   :  { %v495_v49 = vpop.permute.xlu0 %494 }
 0x368   :  { %3769 = vpow2.f32 %v434_v36  ;;  %v500_v56 = vsel %vm376_vm1, %v495_v49, 0 }
 0x375   :  { %v3770_v37 = vpop.eup %3769 }
 0x376   :  { %v436_v38 = vsel %vm429_vm3, %v3770_v37, 0.0 }
 0x377   :  { %437 = vadd.xlane.f32.xlu1 %v436_v38 }
 0x388   :  { %491 = vrot.lane.b32.xlu1 %v374_v17, %s3861_s28 }
 0x38c   :  { %727 = vrot.lane.b32.xlu1 %v611_v14, %s3861_s28 }
 0x390   :  { %724 = vrot.lane.b32.xlu1 %v610_v20, %s3861_s28 }
 0x3b4   :  { %665 = vmax.xlane.f32.xlu1 %v664_v42 }
 0x400   :  { %v438_v43 = vpop.xlane.xlu1 %437 }
 0x401   :  { %3771 = vrcp.f32 %v438_v43  ;;  %v681_v43 = vsel %vm446_vm2, %v675_v33, 0 }
 0x404   :  { %v492_v44 = vpop.permute.xlu1 %491 }
 0x408   :  { %v728_v45 = vpop.permute.xlu1 %727 }
 0x409   :  { %v733_v46 = vsel %vm376_vm1, %v728_v45, 0 }
 0x40a   :  { %3415 = vmatpush3.bf16.xpose.msra.mxu0 %v733_v46 }
 0x40b   :  { %3426 = vmatprep.subr.bf16.mxu0 %v3858_v4 }
 0x40c   :  { %v725_v52 = vpop.permute.xlu1 %724 }
 0x40e   :  { %v3772_v47 = vpop.eup %3771 }
 0x40f   :  { %v440_v48 = vmul.f32 %v3772_v47, %v3770_v37 }
 0x411   :  { %3417 = vmatmul.mubr.msk.bf16.vlgmr.msra.gmra.mxu0 %vm376_vm1, %v725_v52  ;;  %v442_v53 = vpack.c.bf16 %v440_v48, %v440_v48  ;;  %v3621_v52 = vld [vmem:[%s4768_s6 + $0x38] sm:$0xff]  }
 0x412   :  { %3442 = vmatprep.mubr.msk.bf16.mxu0 %vm3860_vm0, %v3858_v4  ;;  %3427 = vmatpush3.bf16.msra.mxu0 %v3621_v52  ;;  %v3649_v52 = vld [vmem:[%s4772_s10 + $0x14] ss:$8 sps:$4 sm:$0xff]  }
 0x413   :  { %3387 = vmatmul.mubr.msk.bf16.vlgmr.msra.gmra.mxu1 %vm429_vm3, %v442_v53  ;;  %v3622_v53 = vld [vmem:[%s4768_s6 + $0x30] sm:$0xff]   ;;  %3428 = vmatprep.subr.bf16.mxu0 %v3858_v4 }
 0x414   :  { %3391 = vmatpush3.bf16.xpose.msra.mxu1 %v500_v56  ;;  %3392 = vmatprep.mubr.msk.bf16.mxu1 %vm3860_vm0, %v3858_v4  ;;  %v3623_v56 = vld [vmem:[%s4768_s6 + $0x28] sm:$0xff]  }
 0x415   :  { %3396 = vmatprep.subr.bf16.mxu1 %v3858_v4 }
 0x416   :  { %3429 = vmatpush3.bf16.msra.mxu0 %v3622_v53  ;;  %v3647_v53 = vld [vmem:[%s4772_s10 + $0x10] ss:$8 sps:$4 sm:$0xff]  }
 0x417   :  { %3430 = vmatprep.subr.bf16.mxu0 %v3858_v4 }
 0x41a   :  { %3431 = vmatpush3.bf16.msra.mxu0 %v3623_v56  ;;  %v3652_v56 = vld [vmem:[%s4772_s10 + $0x4] ss:$8 sps:$4 sm:$0xff]  }
 0x41b   :  { %3393 = vmatmul.mubr.msk.bf16.vlgmr.msra.gmra.mxu1 %vm376_vm1, %v492_v44  ;;  %3432 = vmatprep.subr.bf16.mxu0 %v3858_v4 }
 0x41c   :  { %3398 = vmatprep.mubr.msk.bf16.mxu1 %vm3860_vm0, %v3858_v4 }
 0x43d   :  { %v666_v58 = vpop.xlane.xlu1 %665 }
 0x43e   :  { %v667_v59 = vsub.f32 %v663_v41, %v666_v58  ;;  %v3624_v58 = vld [vmem:[%s4768_s6 + $0x20] sm:$0xff]  }
 0x43f   :  { %3433 = vmatpush3.bf16.msra.mxu0 %v3624_v58  ;;  %v3650_v58 = vld [vmem:[%s4772_s10] ss:$8 sps:$4 sm:$0xff]  }
 0x440   :  { %v668_v0 = vmul.f32 1.442695, %v667_v59  ;;  %v3625_v59 = vld [vmem:[%s4768_s6 + $0x18] sm:$0xff]   ;;  %3434 = vmatprep.subr.bf16.mxu0 %v3858_v4 }
 0x442   :  { %3773 = vpow2.f32 %v668_v0 }
 0x443   :  { %3435 = vmatpush3.bf16.msra.mxu0 %v3625_v59 }
 0x444   :  { %3436 = vmatprep.subr.bf16.mxu0 %v3858_v4 }
 0x44f   :  { %v3774_v19 = vpop.eup %3773 }
 0x450   :  { %v670_v20 = vsel %vm429_vm3, %v3774_v19, 0.0 }
 0x4d1   :  { %v769_v60 = vpop.f32.mrf.mxu0 }
 0x4d2   :  { %v775_v9 = vmul.f32 0.125, %v769_v60  ;;  %v3626_v60 = vld [vmem:[%s4768_s6 + $0x10] sm:$0xff]  }
 0x4d3   :  { %v4150_v62 = vpop.f32.mrf.mxu1  ;;  %v3418_v63 = vpop.f32.mrf.mxu0  ;;  %3437 = vmatpush3.bf16.msra.mxu0 %v3626_v60 }
 0x4d4   :  { %v776_v16 = vadd.f32 %v4133_v40, %v775_v9  ;;  %v3627_v63 = vld [vmem:[%s4768_s6 + $0x8] sm:$0xff]   ;;  %3438 = vmatprep.subr.bf16.mxu0 %v3858_v4 }
 0x4d5   :  { %v3388_v1 = vpop.f32.mrf.mxu1  ;;  %v772_v2 = vpop.f32.mrf.mxu0 }
 0x4d6   :  { %v777_v18 = vsel %vm429_vm3, %v776_v16, -inf }
 0x4d7   :  { %v487_v3 = vpop.f32.mrf.mxu1  ;;  %v3419_v5 = vpop.f32.mrf.mxu0  ;;  %3439 = vmatpush3.bf16.msra.mxu0 %v3627_v63 }
 0x4d8   :  { %3440 = vmatprep.subr.bf16.mxu0 %v3858_v4  ;;  %v3628_v5 = vld [vmem:[%s4768_s6] sm:$0xff]  }
 0x4d9   :  { %v3389_v6 = vpop.f32.mrf.mxu1 }
 0x4db   :  { %v536_v8 = vpop.f32.mrf.mxu1  ;;  %3441 = vmatpush3.bf16.msra.mxu0 %v3628_v5 }
 0x4dc   :  { %v542_v10 = vmul.f32 0.125, %v536_v8 }
 0x4dd   :  { %v3394_v11 = vpop.f32.mrf.mxu1 }
 0x4de   :  { %v543_v12 = vadd.f32 %v4121_v22, %v542_v10 }
 0x4df   :  { %v539_v13 = vpop.f32.mrf.mxu1 }
 0x4e0   :  { %v544_v14 = vsel %vm429_vm3, %v543_v12, -inf }
 0x4e1   :  { %545 = vmax.xlane.f32.xlu0 %v544_v14  ;;  %v3395_v17 = vpop.f32.mrf.mxu1 }
 0x4e5   :  { %778 = vmax.xlane.f32.xlu0 %v777_v18 }
 0x4e9   :  { %671 = vadd.xlane.f32.xlu0 %v670_v20 }
 0x56a   :  { %v546_v21 = vpop.xlane.xlu0 %545 }
 0x56b   :  { %v547_v23 = vsub.f32 %v543_v12, %v546_v21 }
 0x56d   :  { %v548_v24 = vmul.f32 1.442695, %v547_v23 }
 0x56e   :  { %v779_v25 = vpop.xlane.xlu0 %778 }
 0x56f   :  { %3775 = vpow2.f32 %v548_v24  ;;  %v780_v26 = vsub.f32 %v776_v16, %v779_v25  ;;  %v2982_v24 = vld [vmem:[%s4769_s7] ss:$0 sm:$0xff] }
 0x571   :  { %v781_v28 = vmul.f32 1.442695, %v780_v26 }
 0x572   :  { %v672_v34 = vpop.xlane.xlu0 %671 }
 0x573   :  { %3777 = vpow2.f32 %v781_v28 }
 0x57c   :  { %v3776_v29 = vpop.eup %3775 }
 0x57d   :  { %v550_v30 = vsel %vm429_vm3, %v3776_v29, 0.0 }
 0x57e   :  { %551 = vadd.xlane.f32.xlu0 %v550_v30 }
 0x580   :  { %v3778_v31 = vpop.eup %3777 }
 0x581   :  { %v783_v32 = vsel %vm429_vm3, %v3778_v31, 0.0 }
 0x582   :  { %784 = vadd.xlane.f32.xlu1 %v783_v32 }
 0x593   :  { %790 = vrot.lane.b32.xlu1 %v675_v33, %s3861_s28 }
 0x594   :  { %557 = vrot.lane.b32.xlu0 %v4105_v15, %s3861_s28 }
 0x607   :  { %v552_v35 = vpop.xlane.xlu0 %551 }
 0x608   :  { %3779 = vrcp.f32 %v552_v35 }
 0x609   :  { %3781 = vrcp.f32 %v672_v34  ;;  %v3631_v34 = vld [vmem:[%s4772_s10 + $0x74] ss:$8 sps:$4 sm:$0xff]  }
 0x60b   :  { %v558_v36 = vpop.permute.xlu0 %557  ;;  %v785_v38 = vpop.xlane.xlu1 %784 }
 0x60c   :  { %v563_v37 = vsel %vm446_vm2, %v558_v36, 0  ;;  %3783 = vrcp.f32 %v785_v38 }
 0x60d   :  { %3397 = vmatpush3.bf16.msra.mxu1 %v563_v37 }
 0x60e   :  { %3408 = vmatprep.subr.bf16.mxu1 %v3858_v4 }
 0x60f   :  { %v791_v44 = vpop.permute.xlu1 %790 }
 0x610   :  { %v796_v47 = vsel %vm446_vm2, %v791_v44, 0  ;;  %v3638_v44 = vld [vmem:[%s4772_s10 + $0x40] ss:$8 sps:$4 sm:$0xff]  }
 0x615   :  { %v3780_v39 = vpop.eup %3779 }
 0x616   :  { %v554_v41 = vmul.f32 %v3780_v39, %v3776_v29  ;;  %v3782_v42 = vpop.eup %3781 }
 0x617   :  { %v674_v15 = vmul.f32 %v3782_v42, %v3774_v19  ;;  %v3632_v42 = vld [vmem:[%s4772_s10 + $0x60] ss:$8 sps:$4 sm:$0xff]  }
 0x618   :  { %v555_v7 = vpack.c.bf16 %v554_v41, %v554_v41 }
 0x619   :  { %v676_v45 = vpack.c.bf16 %v674_v15, %v674_v15  ;;  %v3784_v46 = vpop.eup %3783  ;;  %v3635_v15 = vld [vmem:[%s4772_s10 + $0x50] ss:$8 sps:$4 sm:$0xff]  }
 0x61a   :  { %3399 = vmatmul.mubr.msk.bf16.vlgmr.msra.gmra.mxu1 %vm429_vm3, %v555_v7  ;;  %v787_v48 = vmul.f32 %v3784_v46, %v3778_v31  ;;  %v3634_v7 = vld [vmem:[%s4772_s10 + $0x64] ss:$8 sps:$4 sm:$0xff]   ;;  %v3643_v46 = vld [vmem:[%s4772_s10 + $0x34] ss:$8 sps:$4 sm:$0xff]  }
 0x61b   :  { %3409 = vmatpush3.bf16.msra.mxu1 %v681_v43  ;;  %3410 = vmatprep.mubr.msk.bf16.mxu1 %vm3860_vm0, %v3858_v4  ;;  %v3637_v43 = vld [vmem:[%s4772_s10 + $0x54] ss:$8 sps:$4 sm:$0xff]  }
 0x61c   :  { %3420 = vmatprep.subr.bf16.mxu1 %v3858_v4  ;;  %v788_v49 = vpack.c.bf16 %v787_v48, %v787_v48  ;;  %v3646_v48 = vld [vmem:[%s4772_s10 + $0x24] ss:$8 sps:$4 sm:$0xff]  }
 0x622   :  { %3411 = vmatmul.mubr.msk.bf16.vlgmr.msra.gmra.mxu1 %vm429_vm3, %v676_v45  ;;  %v3640_v45 = vld [vmem:[%s4772_s10 + $0x44] ss:$8 sps:$4 sm:$0xff]  }
 0x623   :  { %3421 = vmatpush3.bf16.msra.mxu1 %v796_v47  ;;  %3422 = vmatprep.mubr.msk.bf16.mxu1 %vm3860_vm0, %v3858_v4  ;;  %v3641_v47 = vld [vmem:[%s4772_s10 + $0x30] ss:$8 sps:$4 sm:$0xff]  }
 0x624   :  { %1107 = vmatprep.subr.bf16.mxu1 %v3631_v34  ;;  %v1015_v34 = vld [vmem:[%s4773_s11] sm:$0x3] }
 0x62a   :  { %3423 = vmatmul.mubr.msk.bf16.vlgmr.msra.gmra.mxu1 %vm429_vm3, %v788_v49  ;;  %v3644_v49 = vld [vmem:[%s4772_s10 + $0x20] ss:$8 sps:$4 sm:$0xff]  }
 0x62b   :  { %1139 = vmatprep.mubr.bf16.mxu1 %v3859_v27 }
 0x6da   :  { %v599_v0 = vpop.f32.mrf.mxu1 }
 0x6dc   :  { %v3400_v1 = vpop.f32.mrf.mxu1 }
 0x6de   :  { %v602_v2 = vpop.f32.mrf.mxu1 }
 0x6e0   :  { %v3401_v3 = vpop.f32.mrf.mxu1 }
 0x6e2   :  { %v717_v6 = vpop.f32.mrf.mxu1 }
 0x6e4   :  { %v3412_v8 = vpop.f32.mrf.mxu1 }
 0x6e6   :  { %v720_v9 = vpop.f32.mrf.mxu1 }
 0x6e8   :  { %v3413_v10 = vpop.f32.mrf.mxu1 }
 0x6ea   :  { %v832_v11 = vpop.f32.mrf.mxu1 }
 0x6eb   :  { %v3579_v12 = vpack.i.bf16 %v832_v11, %v599_v0  ;;  %v2992_v11 = vld [vmem:[%s4771_s9] ss:$0 sm:$0xff] }
 0x6ec   :  { %v3424_v13 = vpop.f32.mrf.mxu1 }
 0x6ed   :  { %3580 = vrot.lane.b32.xlu1 %v3579_v12, %s3861_s28 }
 0x6ee   :  { %v835_v14 = vpop.f32.mrf.mxu1 }
 0x6f0   :  { %v3425_v16 = vpop.f32.mrf.mxu1 }
 0x75f   :  { %v3581_v17 = vpop.permute.xlu1 %3580 }
 0x760   :  { %v3583_v18 = vunpack.i.h.bf16 %v3581_v17  ;;  %v3582_v19 = vunpack.i.l.bf16 %v3581_v17  ;;  %v3653_v17 = vld [vmem:[%s4774_s12 + $0x78] sm:$0xff]  }
 0x761   :  { %3262 = vmatprep.subr.bf16.mxu0 %v3653_v17 }
 0x762   :  { %v842_v20 = vsel %vm376_vm1, %v717_v6, %v3583_v18  ;;  %v609_v21 = vsel %vm376_vm1, %v4150_v62, %v3582_v19  ;;  %v3629_v62 = vld [vmem:[%s4772_s10 + $0x70] ss:$8 sps:$4 sm:$0xff]   ;;  %v2991_v6 = vld [vmem:[%s4770_s8] ss:$0 sm:$0xff] }
 0x763   :  { %v859_v23 = vpack.c.bf16 %v842_v20, %v609_v21  ;;  %1108 = vmatpush1.bf16.msra.mxu1 %v3629_v62  ;;  %v3654_v18 = vld [vmem:[%s4774_s12 + $0x38] sm:$0xff]   ;;  %v3655_v19 = vld [vmem:[%s4774_s12 + $0x70] sm:$0xff]   ;;  %v3657_v21 = vld [vmem:[%s4774_s12 + $0x68] sm:$0xff]  }
 0x764   :  { %1109 = vmatprep.subr.bf16.mxu1 %v3634_v7  ;;  %v3656_v20 = vld [vmem:[%s4774_s12 + $0x30] sm:$0xff]   ;;  %v3668_v62 = vld [vmem:[%s4774_s12] sm:$0xff]  }
 0x765   :  { %3443 = vmatmul.mubr.bf16.vlgmr.msra.gmra.mxu0 %v859_v23  ;;  %v3658_v23 = vld [vmem:[%s4774_s12 + $0x28] sm:$0xff]  }
 0x766   :  { %3263 = vmatpush3.bf16.msra.mxu0 %v3654_v18 }
 0x767   :  { %1110 = vmatpush1.bf16.msra.mxu1 %v3632_v42  ;;  %3264 = vmatprep.subr.bf16.mxu0 %v3655_v19 }
 0x768   :  { %1111 = vmatprep.subr.bf16.mxu1 %v3637_v43 }
 0x76a   :  { %3265 = vmatpush3.bf16.msra.mxu0 %v3656_v20 }
 0x76b   :  { %1112 = vmatpush1.bf16.msra.mxu1 %v3635_v15  ;;  %3266 = vmatprep.subr.bf16.mxu0 %v3657_v21 }
 0x76c   :  { %1113 = vmatprep.subr.bf16.mxu1 %v3640_v45 }
 0x76e   :  { %3267 = vmatpush3.bf16.msra.mxu0 %v3658_v23 }
 0x76f   :  { %1114 = vmatpush1.bf16.msra.mxu1 %v3638_v44 }
 0x770   :  { %1115 = vmatprep.subr.bf16.mxu1 %v3643_v46 }
 0x773   :  { %1116 = vmatpush1.bf16.msra.mxu1 %v3641_v47 }
 0x774   :  { %1117 = vmatprep.subr.bf16.mxu1 %v3646_v48 }
 0x777   :  { %1118 = vmatpush1.bf16.msra.mxu1 %v3644_v49 }
 0x778   :  { %1119 = vmatprep.subr.bf16.mxu1 %v3649_v52 }
 0x77b   :  { %1120 = vmatpush1.bf16.msra.mxu1 %v3647_v53 }
 0x77c   :  { %1121 = vmatprep.subr.bf16.mxu1 %v3652_v56 }
 0x77f   :  { %1122 = vmatpush1.bf16.msra.mxu1 %v3650_v58 }
 0x825   :  { %v949_v25 = vpop.f32.mrf.mxu0 }
 0x826   :  { %v950_v26 = vadd.f32 %v2982_v24, %v949_v25  ;;  %v3660_v25 = vld [vmem:[%s4774_s12 + $0x20] sm:$0xff]  }
 0x827   :  { %v3444_v28 = vpop.f32.mrf.mxu0 }
 0x828   :  { %v956_v29 = vadd.f32 %v950_v26, %v4075_v50  ;;  %v3661_v26 = vld [vmem:[%s4774_s12 + $0x58] sm:$0xff]  }
 0x829   :  { %v952_v30 = vpop.f32.mrf.mxu0  ;;  %v3662_v28 = vld [vmem:[%s4774_s12 + $0x18] sm:$0xff]  }
 0x82a   :  { %v953_v31 = vadd.f32 %v2982_v24, %v952_v30  ;;  %960 = vadd.xlane.f32.xlu1 %v956_v29  ;;  %v3659_v24 = vld [vmem:[%s4774_s12 + $0x60] sm:$0xff]   ;;  %v3664_v30 = vld [vmem:[%s4774_s12 + $0x10] sm:$0xff]  }
 0x82b   :  { %v3445_v32 = vpop.f32.mrf.mxu0  ;;  %3268 = vmatprep.subr.bf16.mxu0 %v3659_v24 }
 0x82c   :  { %v957_v33 = vadd.f32 %v953_v31, %v4077_v51  ;;  %3269 = vmatpush3.bf16.msra.mxu0 %v3660_v25  ;;  %v3665_v31 = vld [vmem:[%s4774_s12 + $0x48] sm:$0xff]  }
 0x82d   :  { %3270 = vmatprep.subr.bf16.mxu0 %v3661_v26  ;;  %v3666_v32 = vld [vmem:[%s4774_s12 + $0x8] sm:$0xff]  }
 0x82e   :  { %962 = vadd.xlane.f32.xlu0 %v957_v33 }
 0x830   :  { %3271 = vmatpush3.bf16.msra.mxu0 %v3662_v28 }
 0x8b3   :  { %v961_v35 = vpop.xlane.xlu1 %960 }
 0x8b4   :  { %v964_v36 = vmul.f32 0.0078125, %v961_v35  ;;  %v1020_v35 = vrot.slane %v1015_v34, %v4096_v61 }
 0x8b6   :  { %v966_v50 = vsub.f32 %v956_v29, %v964_v36  ;;  %v3663_v29 = vld [vmem:[%s4774_s12 + $0x50] sm:$0xff]   ;;  %v1024_v36 = vrot.slane %v1015_v34, %v4088_v55 }
 0x8b7   :  { %v963_v37 = vpop.xlane.xlu0 %962  ;;  %3272 = vmatprep.subr.bf16.mxu0 %v3663_v29 }
 0x8b8   :  { %v965_v38 = vmul.f32 0.0078125, %v963_v37  ;;  %v968_v39 = vmul.f32 %v966_v50, %v966_v50  ;;  %3273 = vmatpush3.bf16.msra.mxu0 %v3664_v30 }
 0x8b9   :  { %3274 = vmatprep.subr.bf16.mxu0 %v3665_v31  ;;  %v3009_v31 = vld [vmem:[%s4775_s13] ss:$0 sm:$0xff] }
 0x8ba   :  { %v967_v41 = vsub.f32 %v957_v33, %v965_v38  ;;  %970 = vadd.xlane.f32.xlu0 %v968_v39  ;;  %v3667_v33 = vld [vmem:[%s4774_s12 + $0x40] sm:$0xff]  }
 0x8bc   :  { %v969_v51 = vmul.f32 %v967_v41, %v967_v41  ;;  %3275 = vmatpush3.bf16.msra.mxu0 %v3666_v32 }
 0x8bd   :  { %3276 = vmatprep.subr.bf16.mxu0 %v3667_v33 }
 0x8be   :  { %972 = vadd.xlane.f32.xlu0 %v969_v51 }
 0x8c0   :  { %3277 = vmatpush3.bf16.msra.mxu0 %v3668_v62 }
 0x8c1   :  { %3446 = vmatprep.subr.bf16.mxu0 %v3858_v4 }
 0x943   :  { %v971_v59 = vpop.xlane.xlu0 %970 }
 0x944   :  { %v974_v60 = vmul.f32 0.0078125, %v971_v59 }
 0x946   :  { %v976_v63 = vadd.f32 1e-12, %v974_v60 }
 0x947   :  { %v973_v0 = vpop.xlane.xlu0 %972 }
 0x948   :  { %3785 = vrsqrt.f32 %v976_v63  ;;  %v975_v1 = vmul.f32 0.0078125, %v973_v0 }
 0x94a   :  { %v977_v2 = vadd.f32 1e-12, %v975_v1 }
 0x94c   :  { %3787 = vrsqrt.f32 %v977_v2 }
 0x955   :  { %v3786_v3 = vpop.eup %3785 }
 0x956   :  { %v980_v5 = vmul.f32 %v3786_v3, %v966_v50 }
 0x958   :  { %v988_v10 = vmul.f32 %v2991_v6, %v980_v5 }
 0x959   :  { %v3788_v8 = vpop.eup %3787 }
 0x95a   :  { %v981_v9 = vmul.f32 %v3788_v8, %v967_v41  ;;  %v4271_v13 = vadd.f32 %v2992_v11, %v988_v10 }
 0x95c   :  { %v989_v12 = vmul.f32 %v2991_v6, %v981_v9 }
 0x95e   :  { %v4273_v14 = vadd.f32 %v2992_v11, %v989_v12 }
 0x960   :  { %v1014_v16 = vpack.c.bf16 %v4273_v14, %v4271_v13 }
 0x962   :  { %1140 = vmatmul.mubr.bf16.vlgmr.msra.gmra.mxu1 %v1014_v16 }
 0x963   :  { %1618 = vmatprep.mubr.bf16.mxu1 %v3859_v27 }
 0xa22   :  { %v1141_v50 = vpop.f32.mrf.mxu1 }
 0xa23   :  { %v1142_v37 = vadd.f32 %v1141_v50, %v1020_v35 }
 0xa24   :  { %v1143_v38 = vpop.f32.mrf.mxu1 }
 0xa25   :  { %v1154_v39 = vmul.f32 0.044715, %v1142_v37  ;;  %v1144_v41 = vadd.f32 %v1143_v38, %v1024_v36  ;;  %v1150_v21 = vmul.f32 0.5, %v1142_v37 }
 0xa26   :  { %v1145_v51 = vpop.f32.mrf.mxu1 }
 0xa27   :  { %v1158_v7 = vmul.f32 %v1154_v39, %v1142_v37  ;;  %v1155_v42 = vmul.f32 0.044715, %v1144_v41  ;;  %v1146_v43 = vadd.f32 %v1145_v51, %v1020_v35  ;;  %v1151_v18 = vmul.f32 0.5, %v1144_v41  ;;  %v3669_v39 = vld [vmem:[%s4792_s26 + $0x168] ss:$12 sps:$4 sm:$0xff]  }
 0xa28   :  { %v1147_v15 = vpop.f32.mrf.mxu1  ;;  %v3672_v51 = vld [vmem:[%s4792_s26 + $0x170] ss:$12 sps:$4 sm:$0xff]  }
 0xa29   :  { %v1162_v44 = vmul.f32 %v1158_v7, %v1142_v37  ;;  %v1159_v45 = vmul.f32 %v1155_v42, %v1144_v41  ;;  %v1156_v46 = vmul.f32 0.044715, %v1146_v43  ;;  %v1148_v47 = vadd.f32 %v1147_v15, %v1024_v36 }
 0xa2a   :  { %v1152_v16 = vmul.f32 0.5, %v1146_v43 }
 0xa2b   :  { %v1166_v48 = vadd.f32 %v1162_v44, %v1142_v37  ;;  %v1163_v49 = vmul.f32 %v1159_v45, %v1144_v41  ;;  %v1160_v52 = vmul.f32 %v1156_v46, %v1146_v43  ;;  %v1157_v53 = vmul.f32 0.044715, %v1148_v47  ;;  %v3675_v46 = vld [vmem:[%s4792_s26 + $0x154] ss:$12 sps:$4 sm:$0xff]  }
 0xa2c   :  { %v1153_v19 = vmul.f32 0.5, %v1148_v47 }
 0xa2d   :  { %v1164_v56 = vmul.f32 %v1160_v52, %v1146_v43  ;;  %v1161_v58 = vmul.f32 %v1157_v53, %v1148_v47  ;;  %v1167_v59 = vadd.f32 %v1163_v49, %v1144_v41  ;;  %v1170_v60 = vmul.f32 0.7978846, %v1166_v48  ;;  %v3671_v41 = vld [vmem:[%s4792_s26 + $0x16c] ss:$12 sps:$4 sm:$0xff]   ;;  %v3679_v49 = vld [vmem:[%s4792_s26 + $0x13c] ss:$12 sps:$4 sm:$0xff]  }
 0xa2e   :  { %1586 = vmatprep.subr.bf16.mxu1 %v3671_v41  ;;  %v3676_v48 = vld [vmem:[%s4792_s26 + $0x158] ss:$12 sps:$4 sm:$0xff]   ;;  %v3680_v53 = vld [vmem:[%s4792_s26 + $0x140] ss:$12 sps:$4 sm:$0xff]  }
 0xa2f   :  { %v1168_v63 = vadd.f32 %v1164_v56, %v1146_v43  ;;  %v1165_v0 = vmul.f32 %v1161_v58, %v1148_v47  ;;  %v1171_v1 = vmul.f32 0.7978846, %v1167_v59  ;;  %1587 = vmatpush1.bf16.msra.mxu1 %v3669_v39  ;;  %v3677_v52 = vld [vmem:[%s4792_s26 + $0x138] ss:$12 sps:$4 sm:$0xff]   ;;  %v3681_v56 = vld [vmem:[%s4792_s26 + $0x120] ss:$12 sps:$4 sm:$0xff]  }
 0xa30   :  { %1588 = vmatprep.subr.bf16.mxu1 %v3675_v46  ;;  %v3683_v58 = vld [vmem:[%s4792_s26 + $0x124] ss:$12 sps:$4 sm:$0xff]   ;;  %v3684_v59 = vld [vmem:[%s4792_s26 + $0x128] ss:$12 sps:$4 sm:$0xff]  }
 0xa31   :  { %v1172_v2 = vmul.f32 0.7978846, %v1168_v63  ;;  %v1169_v3 = vadd.f32 %v1165_v0, %v1148_v47  ;;  %3789 = vtanh.f32 %v1171_v1  ;;  %v3673_v47 = vld [vmem:[%s4792_s26 + $0x150] ss:$12 sps:$4 sm:$0xff]   ;;  %v3685_v63 = vld [vmem:[%s4792_s26 + $0x108] ss:$12 sps:$4 sm:$0xff]  }
 0xa32   :  { %3791 = vtanh.f32 %v1170_v60  ;;  %v3687_v60 = vld [vmem:[%s4792_s26 + $0x10c] ss:$12 sps:$4 sm:$0xff]   ;;  %v3688_v0 = vld [vmem:[%s4792_s26 + $0x110] ss:$12 sps:$4 sm:$0xff]   ;;  %v3691_v1 = vld [vmem:[%s4792_s26 + $0xf4] ss:$12 sps:$4 sm:$0xff]  }
 0xa33   :  { %3793 = vtanh.f32 %v1172_v2  ;;  %v1173_v5 = vmul.f32 0.7978846, %v1169_v3  ;;  %1589 = vmatpush1.bf16.msra.mxu1 %v3673_v47  ;;  %v3689_v2 = vld [vmem:[%s4792_s26 + $0xf0] ss:$12 sps:$4 sm:$0xff]   ;;  %v3692_v3 = vld [vmem:[%s4792_s26 + $0xf8] ss:$12 sps:$4 sm:$0xff]  }
 0xa34   :  { %1590 = vmatprep.subr.bf16.mxu1 %v3679_v49 }
 0xa35   :  { %3795 = vtanh.f32 %v1173_v5  ;;  %v3695_v5 = vld [vmem:[%s4792_s26 + $0xdc] ss:$12 sps:$4 sm:$0xff]  }
 0xa37   :  { %1591 = vmatpush1.bf16.msra.mxu1 %v3677_v52 }
 0xa38   :  { %1592 = vmatprep.subr.bf16.mxu1 %v3683_v58 }
 0xa3b   :  { %1593 = vmatpush1.bf16.msra.mxu1 %v3681_v56 }
 0xa3c   :  { %1594 = vmatprep.subr.bf16.mxu1 %v3687_v60 }
 0xa3e   :  { %v3790_v6 = vpop.eup %3789 }
 0xa3f   :  { %v3792_v8 = vpop.eup %3791  ;;  %v1179_v10 = vadd.f32 1.0, %v3790_v6  ;;  %1595 = vmatpush1.bf16.msra.mxu1 %v3685_v63  ;;  %v3693_v6 = vld [vmem:[%s4792_s26 + $0xd8] ss:$12 sps:$4 sm:$0xff]  }
 0xa40   :  { %v3794_v9 = vpop.eup %3793  ;;  %v1178_v17 = vadd.f32 1.0, %v3792_v8  ;;  %1596 = vmatprep.subr.bf16.mxu1 %v3691_v1  ;;  %v3696_v8 = vld [vmem:[%s4792_s26 + $0xe0] ss:$12 sps:$4 sm:$0xff]  }
 0xa41   :  { %v1180_v11 = vadd.f32 1.0, %v3794_v9  ;;  %v1183_v24 = vmul.f32 %v1179_v10, %v1151_v18  ;;  %v3699_v9 = vld [vmem:[%s4792_s26 + $0xc4] ss:$12 sps:$4 sm:$0xff]   ;;  %v3697_v10 = vld [vmem:[%s4792_s26 + $0xc0] ss:$12 sps:$4 sm:$0xff]  }
 0xa42   :  { %v3796_v12 = vpop.eup %3795  ;;  %v1182_v26 = vmul.f32 %v1178_v17, %v1150_v21 }
 0xa43   :  { %v1181_v20 = vadd.f32 1.0, %v3796_v12  ;;  %v1184_v23 = vmul.f32 %v1180_v11, %v1152_v16  ;;  %1597 = vmatpush1.bf16.msra.mxu1 %v3689_v2  ;;  %v3700_v11 = vld [vmem:[%s4792_s26 + $0xc8] ss:$12 sps:$4 sm:$0xff]  }
 0xa44   :  { %1598 = vmatprep.subr.bf16.mxu1 %v3695_v5 }
 0xa45   :  { %v1185_v25 = vmul.f32 %v1181_v20, %v1153_v19  ;;  %v1218_v29 = vpack.c.bf16 %v1184_v23, %v1182_v26 }
 0xa47   :  { %v1219_v28 = vpack.c.bf16 %v1185_v25, %v1183_v24  ;;  %1599 = vmatpush1.bf16.msra.mxu1 %v3693_v6  ;;  %v3026_v24 = vld [vmem:[%s4776_s14] ss:$0 sm:$0xff] }
 0xa48   :  { %1600 = vmatprep.subr.bf16.mxu1 %v3699_v9 }
 0xa49   :  { %1355 = vmatprep.mubr.bf16.mxu0 %v1219_v28 }
 0xa4a   :  { %1356 = vmatmul.mubr.bf16.vlgmr.msra.gmra.mxu0 %v1218_v29  ;;  %v3027_v29 = vld [vmem:[%s4777_s15] ss:$0 sm:$0xff] }
 0xa4b   :  { %3462 = vmatprep.mubr.msk.bf16.mxu0 %vm3860_vm0, %v3858_v4  ;;  %3447 = vmatpush3.bf16.msra.mxu0 %v3672_v51 }
 0xa4c   :  { %3448 = vmatprep.subr.bf16.mxu0 %v3858_v4  ;;  %1601 = vmatpush1.bf16.msra.mxu1 %v3697_v10 }
 0xa4d   :  { %3466 = vmatprep.subr.bf16.mxu1 %v3858_v4 }
 0xa4f   :  { %3449 = vmatpush3.bf16.msra.mxu0 %v3676_v48 }
 0xa50   :  { %3450 = vmatprep.subr.bf16.mxu0 %v3858_v4 }
 0xa53   :  { %3451 = vmatpush3.bf16.msra.mxu0 %v3680_v53 }
 0xa54   :  { %3452 = vmatprep.subr.bf16.mxu0 %v3858_v4 }
 0xa57   :  { %3453 = vmatpush3.bf16.msra.mxu0 %v3684_v59 }
 0xa58   :  { %3454 = vmatprep.subr.bf16.mxu0 %v3858_v4 }
 0xa5b   :  { %3455 = vmatpush3.bf16.msra.mxu0 %v3688_v0 }
 0xa5c   :  { %3456 = vmatprep.subr.bf16.mxu0 %v3858_v4 }
 0xa5f   :  { %3457 = vmatpush3.bf16.msra.mxu0 %v3692_v3 }
 0xa60   :  { %3458 = vmatprep.subr.bf16.mxu0 %v3858_v4 }
 0xa63   :  { %3459 = vmatpush3.bf16.msra.mxu0 %v3696_v8 }
 0xa64   :  { %3460 = vmatprep.subr.bf16.mxu0 %v3858_v4 }
 0xa67   :  { %3461 = vmatpush3.bf16.msra.mxu0 %v3700_v11 }
 0xa68   :  { %3490 = vmatprep.subr.bf16.mxu0 %v3858_v4 }
 0xb0a   :  { %v3278_v30 = vpop.f32.mrf.mxu0 }
 0xb0c   :  { %v3279_v32 = vpop.f32.mrf.mxu0 }
 0xb0d   :  { %v3280_v33 = vadd.f32 %v3279_v32, %v3278_v30 }
 0xb0e   :  { %v3281_v62 = vpop.f32.mrf.mxu0 }
 0xb0f   :  { %v1358_v34 = vadd.f32 %v3280_v33, %v3009_v31 }
 0xb10   :  { %v3282_v35 = vpop.f32.mrf.mxu0 }
 0xb11   :  { %v3283_v36 = vadd.f32 %v3282_v35, %v3281_v62  ;;  %v1364_v50 = vadd.f32 %v1358_v34, %v4271_v13  ;;  %v3060_v62 = vld [vmem:[%s4767_s5 + $0x3] sm:$0x7] }
 0xb12   :  { %v1450_v34 = vrot.slane %v3060_v62, %v4088_v55 }
 0xb13   :  { %v1361_v37 = vadd.f32 %v3283_v36, %v3009_v31  ;;  %1368 = vadd.xlane.f32.xlu1 %v1364_v50 }
 0xb15   :  { %v1365_v38 = vadd.f32 %v1361_v37, %v4273_v14 }
 0xb17   :  { %1370 = vadd.xlane.f32.xlu0 %v1365_v38 }
 0xb9c   :  { %v1369_v13 = vpop.xlane.xlu1 %1368 }
 0xb9d   :  { %v1372_v14 = vmul.f32 0.0078125, %v1369_v13  ;;  %v1446_v13 = vrot.slane %v3060_v62, %v4096_v61 }
 0xb9f   :  { %v4349_v7 = vsub.f32 %v1364_v50, %v1372_v14 }
 0xba0   :  { %v1371_v42 = vpop.xlane.xlu0 %1370 }
 0xba1   :  { %v1373_v43 = vmul.f32 0.0078125, %v1371_v42  ;;  %v1376_v15 = vmul.f32 %v4349_v7, %v4349_v7 }
 0xba3   :  { %v4353_v44 = vsub.f32 %v1365_v38, %v1373_v43  ;;  %1378 = vadd.xlane.f32.xlu1 %v1376_v15  ;;  %v1454_v38 = vrot.slane %v3060_v62, %v157_v57 }
 0xba5   :  { %v1377_v45 = vmul.f32 %v4353_v44, %v4353_v44 }
 0xba7   :  { %1380 = vadd.xlane.f32.xlu0 %v1377_v45 }
 0xc2c   :  { %v1379_v12 = vpop.xlane.xlu1 %1378 }
 0xc2d   :  { %v1382_v16 = vmul.f32 0.0078125, %v1379_v12 }
 0xc2f   :  { %v1384_v17 = vadd.f32 1e-12, %v1382_v16 }
 0xc30   :  { %v1381_v18 = vpop.xlane.xlu0 %1380 }
 0xc31   :  { %3797 = vrsqrt.f32 %v1384_v17  ;;  %v1383_v19 = vmul.f32 0.0078125, %v1381_v18 }
 0xc33   :  { %v1385_v20 = vadd.f32 1e-12, %v1383_v19 }
 0xc35   :  { %3799 = vrsqrt.f32 %v1385_v20 }
 0xc3e   :  { %v3798_v21 = vpop.eup %3797 }
 0xc3f   :  { %v1388_v23 = vmul.f32 %v3798_v21, %v4349_v7 }
 0xc41   :  { %v1396_v28 = vmul.f32 %v3026_v24, %v1388_v23 }
 0xc42   :  { %v3800_v25 = vpop.eup %3799 }
 0xc43   :  { %v1389_v26 = vmul.f32 %v3800_v25, %v4353_v44  ;;  %v4436_v31 = vadd.f32 %v3027_v29, %v1396_v28 }
 0xc45   :  { %v1397_v30 = vmul.f32 %v3026_v24, %v1389_v26 }
 0xc47   :  { %v4438_v32 = vadd.f32 %v3027_v29, %v1397_v30 }
 0xc49   :  { %v1439_v33 = vpack.c.bf16 %v4438_v32, %v4436_v31 }
 0xc4b   :  { %1619 = vmatmul.mubr.bf16.vlgmr.msra.gmra.mxu1 %v1439_v33  ;;  %3463 = vmatmul.mubr.bf16.vlgmr.msra.gmra.mxu0 %v1439_v33 }
 0xc4c   :  { %3468 = vmatprep.mubr.msk.bf16.mxu1 %vm3860_vm0, %v3858_v4  ;;  %3492 = vmatprep.mubr.msk.bf16.mxu0 %vm3860_vm0, %v3858_v4 }
 0xd0b   :  { %v1620_v35 = vpop.f32.mrf.mxu1  ;;  %v1663_v36 = vpop.f32.mrf.mxu0 }
 0xd0c   :  { %v1664_v15 = vadd.f32 %v1663_v36, %v1454_v38  ;;  %v1621_v46 = vadd.f32 %v1620_v35, %v1446_v13 }
 0xd0d   :  { %v1622_v50 = vpop.f32.mrf.mxu1  ;;  %v3464_v37 = vpop.f32.mrf.mxu0 }
 0xd0e   :  { %v1623_v39 = vadd.f32 %v1622_v50, %v1450_v34  ;;  %v4457_v54 = vpack.c.bf16 %v1664_v15, %v1664_v15  ;;  %v1670_v48 = vpack.c.bf16 %v1621_v46, %v1621_v46 }
 0xd0f   :  { %v1624_v41 = vpop.f32.mrf.mxu1  ;;  %v1666_v51 = vpop.f32.mrf.mxu0 }
 0xd10   :  { %v1671_v14 = vpack.c.bf16 %v1623_v39, %v1623_v39  ;;  %v4453_v7 = vadd.f32 %v1666_v51, %v1454_v38  ;;  %v1625_v49 = vadd.f32 %v1624_v41, %v1446_v13  ;;  %v1737_v52 = vsel %vm446_vm2, %v4457_v54, 0 }
 0xd11   :  { %v1626_v42 = vpop.f32.mrf.mxu1  ;;  %v3465_v43 = vpop.f32.mrf.mxu0 }
 0xd12   :  { %v1676_v44 = vsel %vm376_vm1, %v1671_v14, 0  ;;  %v1627_v45 = vadd.f32 %v1626_v42, %v1450_v34  ;;  %v1899_v53 = vpack.c.bf16 %v1625_v49, %v1625_v49 }
 0xd13   :  { %3467 = vmatpush3.bf16.xpose.msra.mxu1 %v1676_v44 }
 0xd14   :  { %v1900_v47 = vpack.c.bf16 %v1627_v45, %v1627_v45  ;;  %3472 = vmatprep.subr.bf16.mxu1 %v3858_v4 }
 0xd16   :  { %v1905_v57 = vsel %vm376_vm1, %v1900_v47, 0 }
 0xd17   :  { %3491 = vmatpush3.bf16.xpose.msra.mxu0 %v1905_v57 }
 0xd18   :  { %3502 = vmatprep.subr.bf16.mxu0 %v3858_v4 }
 0xd1a   :  { %3469 = vmatmul.mubr.msk.bf16.vlgmr.msra.gmra.mxu1 %vm376_vm1, %v1670_v48 }
 0xd1b   :  { %3473 = vmatpush3.bf16.msra.mxu1 %v1737_v52  ;;  %3474 = vmatprep.mubr.msk.bf16.mxu1 %vm3860_vm0, %v3858_v4 }
 0xd1c   :  { %3478 = vmatprep.subr.bf16.mxu1 %v3858_v4 }
 0xd1e   :  { %3493 = vmatmul.mubr.msk.bf16.vlgmr.msra.gmra.mxu0 %vm376_vm1, %v1899_v53 }
 0xd1f   :  { %3504 = vmatprep.mubr.msk.bf16.mxu0 %vm3860_vm0, %v3858_v4 }
 0xdda   :  { %v1712_v56 = vpop.f32.mrf.mxu1 }
 0xddb   :  { %v1718_v58 = vmul.f32 0.125, %v1712_v56 }
 0xddc   :  { %v3470_v59 = vpop.f32.mrf.mxu1 }
 0xddd   :  { %v1719_v60 = vadd.f32 %v4121_v22, %v1718_v58 }
 0xdde   :  { %v1715_v63 = vpop.f32.mrf.mxu1  ;;  %v1941_v0 = vpop.f32.mrf.mxu0 }
 0xddf   :  { %v1720_v1 = vsel %vm429_vm3, %v1719_v60, -inf  ;;  %v1947_v19 = vmul.f32 0.125, %v1941_v0 }
 0xde0   :  { %v3494_v2 = vpop.f32.mrf.mxu0  ;;  %1721 = vmax.xlane.f32.xlu1 %v1720_v1  ;;  %v3471_v3 = vpop.f32.mrf.mxu1 }
 0xde1   :  { %v1948_v20 = vadd.f32 %v4133_v40, %v1947_v19 }
 0xde2   :  { %v1944_v5 = vpop.f32.mrf.mxu0 }
 0xde3   :  { %v1949_v21 = vsel %vm429_vm3, %v1948_v20, -inf  ;;  %v1960_v5 = vpack.c.bf16 %v4453_v7, %v4453_v7 }
 0xde4   :  { %v3495_v6 = vpop.f32.mrf.mxu0 }
 0xdf1   :  { %1783 = vrot.lane.b32.xlu1 %v1671_v14, %s3861_s28 }
 0xdf5   :  { %2012 = vrot.lane.b32.xlu1 %v1900_v47, %s3861_s28 }
 0xdf9   :  { %2009 = vrot.lane.b32.xlu1 %v1899_v53, %s3861_s28 }
 0xe69   :  { %v1722_v8 = vpop.xlane.xlu1 %1721 }
 0xe6a   :  { %v1723_v9 = vsub.f32 %v1719_v60, %v1722_v8 }
 0xe6c   :  { %v1724_v10 = vmul.f32 1.442695, %v1723_v9 }
 0xe6d   :  { %v1784_v11 = vpop.permute.xlu1 %1783 }
 0xe6e   :  { %3801 = vpow2.f32 %v1724_v10  ;;  %v1789_v28 = vsel %vm376_vm1, %v1784_v11, 0 }
 0xe71   :  { %v2013_v22 = vpop.permute.xlu1 %2012 }
 0xe72   :  { %v2018_v12 = vsel %vm376_vm1, %v2013_v22, 0 }
 0xe73   :  { %3503 = vmatpush3.bf16.xpose.msra.mxu0 %v2018_v12  ;;  %v1966_v12 = vsel %vm446_vm2, %v1960_v5, 0 }
 0xe74   :  { %3514 = vmatprep.subr.bf16.mxu0 %v3858_v4 }
 0xe75   :  { %v2010_v16 = vpop.permute.xlu1 %2009 }
 0xe7a   :  { %3505 = vmatmul.mubr.msk.bf16.vlgmr.msra.gmra.mxu0 %vm376_vm1, %v2010_v16 }
 0xe7b   :  { %v3802_v17 = vpop.eup %3801  ;;  %3530 = vmatprep.mubr.msk.bf16.mxu0 %vm3860_vm0, %v3858_v4 }
 0xe7c   :  { %v1726_v18 = vsel %vm429_vm3, %v3802_v17, 0.0 }
 0xe7d   :  { %1727 = vadd.xlane.f32.xlu0 %v1726_v18 }
 0xe93   :  { %1780 = vrot.lane.b32.xlu0 %v1670_v48, %s3861_s28 }
 0xeb2   :  { %1950 = vmax.xlane.f32.xlu0 %v1949_v21 }
 0xf06   :  { %v1728_v23 = vpop.xlane.xlu0 %1727 }
 0xf07   :  { %3803 = vrcp.f32 %v1728_v23  ;;  %v3701_v23 = vld [vmem:[%s4768_s6 + $0x78] sm:$0xff]  }
 0xf08   :  { %3515 = vmatpush3.bf16.msra.mxu0 %v3701_v23 }
 0xf09   :  { %3516 = vmatprep.subr.bf16.mxu0 %v3858_v4 }
 0xf0a   :  { %v1781_v29 = vpop.permute.xlu0 %1780 }
 0xf14   :  { %v3804_v24 = vpop.eup %3803 }
 0xf15   :  { %v1730_v25 = vmul.f32 %v3804_v24, %v3802_v17  ;;  %v3702_v24 = vld [vmem:[%s4768_s6 + $0x70] sm:$0xff]  }
 0xf16   :  { %3517 = vmatpush3.bf16.msra.mxu0 %v3702_v24 }
 0xf17   :  { %v1732_v26 = vpack.c.bf16 %v1730_v25, %v1730_v25  ;;  %v3703_v25 = vld [vmem:[%s4768_s6 + $0x68] sm:$0xff]   ;;  %3518 = vmatprep.subr.bf16.mxu0 %v3858_v4 }
 0xf19   :  { %3475 = vmatmul.mubr.msk.bf16.vlgmr.msra.gmra.mxu1 %vm429_vm3, %v1732_v26  ;;  %v3705_v26 = vld [vmem:[%s4768_s6 + $0x58] sm:$0xff]  }
 0xf1a   :  { %3479 = vmatpush3.bf16.xpose.msra.mxu1 %v1789_v28  ;;  %3480 = vmatprep.mubr.msk.bf16.mxu1 %vm3860_vm0, %v3858_v4  ;;  %v3706_v28 = vld [vmem:[%s4768_s6 + $0x50] sm:$0xff]  }
 0xf1b   :  { %3484 = vmatprep.subr.bf16.mxu1 %v3858_v4  ;;  %3519 = vmatpush3.bf16.msra.mxu0 %v3703_v25 }
 0xf1c   :  { %3520 = vmatprep.subr.bf16.mxu0 %v3858_v4 }
 0xf21   :  { %3481 = vmatmul.mubr.msk.bf16.vlgmr.msra.gmra.mxu1 %vm376_vm1, %v1781_v29  ;;  %v3707_v29 = vld [vmem:[%s4768_s6 + $0x48] sm:$0xff]  }
 0xf22   :  { %3486 = vmatprep.mubr.msk.bf16.mxu1 %vm3860_vm0, %v3858_v4 }
 0xf3a   :  { %v2054_v30 = vpop.f32.mrf.mxu0 }
 0xf3b   :  { %v2060_v33 = vmul.f32 0.125, %v2054_v30  ;;  %v1951_v37 = vpop.xlane.xlu0 %1950 }
 0xf3c   :  { %v3506_v62 = vpop.f32.mrf.mxu0  ;;  %v1952_v38 = vsub.f32 %v1948_v20, %v1951_v37 }
 0xf3d   :  { %v2061_v34 = vadd.f32 %v4133_v40, %v2060_v33  ;;  %v3835_v40 = vld [vmem:[%s4795_s27] ss:$0 sm:$0xff] }
 0xf3e   :  { %v2057_v35 = vpop.f32.mrf.mxu0  ;;  %v1953_v39 = vmul.f32 1.442695, %v1952_v38 }
 0xf3f   :  { %v2062_v36 = vsel %vm429_vm3, %v2061_v34, -inf  ;;  %v3708_v35 = vld [vmem:[%s4768_s6 + $0x40] sm:$0xff]  }
 0xf40   :  { %2063 = vmax.xlane.f32.xlu0 %v2062_v36  ;;  %v3507_v50 = vpop.f32.mrf.mxu0  ;;  %3805 = vpow2.f32 %v1953_v39 }
 0xf4d   :  { %v3806_v47 = vpop.eup %3805 }
 0xf4e   :  { %v1955_v48 = vsel %vm429_vm3, %v3806_v47, 0.0 }
 0xfc9   :  { %v2064_v49 = vpop.xlane.xlu0 %2063 }
 0xfca   :  { %v2065_v52 = vsub.f32 %v2061_v34, %v2064_v49 }
 0xfcc   :  { %v2066_v58 = vmul.f32 1.442695, %v2065_v52 }
 0xfd9   :  { %v4494_v41 = vpop.f32.mrf.mxu1 }
 0xfdb   :  { %v3476_v51 = vpop.f32.mrf.mxu1 }
 0xfdd   :  { %v1776_v13 = vpop.f32.mrf.mxu1 }
 0xfdf   :  { %v3477_v14 = vpop.f32.mrf.mxu1 }
 0xfe1   :  { %v1825_v42 = vpop.f32.mrf.mxu1 }
 0xfe2   :  { %v1831_v43 = vmul.f32 0.125, %v1825_v42 }
 0xfe3   :  { %v3482_v15 = vpop.f32.mrf.mxu1 }
 0xfe4   :  { %v1832_v44 = vadd.f32 %v3835_v40, %v1831_v43 }
 0xfe5   :  { %v1828_v45 = vpop.f32.mrf.mxu1 }
 0xfe6   :  { %v1833_v46 = vsel %vm429_vm3, %v1832_v44, -inf }
 0xfe7   :  { %1834 = vmax.xlane.f32.xlu1 %v1833_v46  ;;  %v3483_v57 = vpop.f32.mrf.mxu1 }
 0xfeb   :  { %1956 = vadd.xlane.f32.xlu1 %v1955_v48 }
 0xffc   :  { %1846 = vrot.lane.b32.xlu1 %v4457_v54, %s3861_s28 }
0x1070   :  { %v1835_v53 = vpop.xlane.xlu1 %1834 }
0x1071   :  { %v1836_v56 = vsub.f32 %v1832_v44, %v1835_v53 }
0x1073   :  { %v1837_v59 = vmul.f32 1.442695, %v1836_v56 }
0x1074   :  { %v1957_v60 = vpop.xlane.xlu1 %1956 }
0x1075   :  { %3807 = vpow2.f32 %v1837_v59 }
0x1076   :  { %3809 = vpow2.f32 %v2066_v58 }
0x1078   :  { %v1847_v63 = vpop.permute.xlu1 %1846 }
0x1079   :  { %v1852_v0 = vsel %vm446_vm2, %v1847_v63, 0 }
0x107a   :  { %3485 = vmatpush3.bf16.msra.mxu1 %v1852_v0 }
0x107b   :  { %3496 = vmatprep.subr.bf16.mxu1 %v3858_v4 }
0x1082   :  { %v3808_v1 = vpop.eup %3807 }
0x1083   :  { %v1839_v2 = vsel %vm429_vm3, %v3808_v1, 0.0  ;;  %v3810_v3 = vpop.eup %3809 }
0x1084   :  { %1840 = vadd.xlane.f32.xlu0 %v1839_v2  ;;  %v2068_v54 = vsel %vm429_vm3, %v3810_v3, 0.0 }
0x1088   :  { %2069 = vadd.xlane.f32.xlu0 %v2068_v54 }
0x109e   :  { %2075 = vrot.lane.b32.xlu0 %v1960_v5, %s3861_s28  ;;  %v3714_v5 = vld [vmem:[%s4772_s10 + $0xe4] ss:$8 sps:$4 sm:$0xff]  }
0x110d   :  { %v1841_v6 = vpop.xlane.xlu0 %1840 }
0x110e   :  { %3811 = vrcp.f32 %v1841_v6  ;;  %v3712_v6 = vld [vmem:[%s4772_s10 + $0xe0] ss:$8 sps:$4 sm:$0xff]  }
0x110f   :  { %3813 = vrcp.f32 %v1957_v60  ;;  %v3711_v60 = vld [vmem:[%s4772_s10 + $0xf4] ss:$8 sps:$4 sm:$0xff]  }
0x1111   :  { %v2070_v8 = vpop.xlane.xlu0 %2069 }
0x1112   :  { %3815 = vrcp.f32 %v2070_v8  ;;  %v3717_v8 = vld [vmem:[%s4772_s10 + $0xd4] ss:$8 sps:$4 sm:$0xff]  }
0x1115   :  { %v2076_v16 = vpop.permute.xlu0 %2075 }
0x1116   :  { %v2081_v19 = vsel %vm446_vm2, %v2076_v16, 0  ;;  %v3724_v16 = vld [vmem:[%s4772_s10 + $0xa0] ss:$8 sps:$4 sm:$0xff]  }
0x111b   :  { %v3812_v9 = vpop.eup %3811 }
0x111c   :  { %v1843_v10 = vmul.f32 %v3812_v9, %v3808_v1  ;;  %v3814_v22 = vpop.eup %3813  ;;  %v3715_v9 = vld [vmem:[%s4772_s10 + $0xd0] ss:$8 sps:$4 sm:$0xff]  }
0x111d   :  { %v1959_v7 = vmul.f32 %v3814_v22, %v3806_v47  ;;  %v3110_v47 = vld [vmem:[%s4769_s7 + $0x1] ss:$0 sm:$0xff]  ;;  %v3723_v22 = vld [vmem:[%s4772_s10 + $0xb4] ss:$8 sps:$4 sm:$0xff]  }
0x111e   :  { %v1844_v11 = vpack.c.bf16 %v1843_v10, %v1843_v10  ;;  %v3718_v10 = vld [vmem:[%s4772_s10 + $0xc0] ss:$8 sps:$4 sm:$0xff]  }
0x111f   :  { %v1961_v17 = vpack.c.bf16 %v1959_v7, %v1959_v7  ;;  %v3816_v18 = vpop.eup %3815  ;;  %v3726_v7 = vld [vmem:[%s4772_s10 + $0xa4] ss:$8 sps:$4 sm:$0xff]  }
0x1120   :  { %3487 = vmatmul.mubr.msk.bf16.vlgmr.msra.gmra.mxu1 %vm429_vm3, %v1844_v11  ;;  %v2072_v20 = vmul.f32 %v3816_v18, %v3810_v3  ;;  %v3720_v11 = vld [vmem:[%s4772_s10 + $0xc4] ss:$8 sps:$4 sm:$0xff]   ;;  %v3727_v18 = vld [vmem:[%s4772_s10 + $0x90] ss:$8 sps:$4 sm:$0xff]  }
0x1121   :  { %3497 = vmatpush3.bf16.msra.mxu1 %v1966_v12  ;;  %3498 = vmatprep.mubr.msk.bf16.mxu1 %vm3860_vm0, %v3858_v4  ;;  %v3721_v12 = vld [vmem:[%s4772_s10 + $0xb0] ss:$8 sps:$4 sm:$0xff]  }
0x1122   :  { %3508 = vmatprep.subr.bf16.mxu1 %v3858_v4  ;;  %v2073_v21 = vpack.c.bf16 %v2072_v20, %v2072_v20  ;;  %v3730_v20 = vld [vmem:[%s4772_s10 + $0x80] ss:$8 sps:$4 sm:$0xff]  }
0x1128   :  { %3499 = vmatmul.mubr.msk.bf16.vlgmr.msra.gmra.mxu1 %vm429_vm3, %v1961_v17  ;;  %v3729_v17 = vld [vmem:[%s4772_s10 + $0x94] ss:$8 sps:$4 sm:$0xff]  }
0x1129   :  { %3509 = vmatpush3.bf16.msra.mxu1 %v2081_v19  ;;  %3510 = vmatprep.mubr.msk.bf16.mxu1 %vm3860_vm0, %v3858_v4  ;;  %v3732_v19 = vld [vmem:[%s4772_s10 + $0x84] ss:$8 sps:$4 sm:$0xff]  }
0x112a   :  { %2398 = vmatprep.subr.bf16.mxu1 %v3711_v60 }
0x1130   :  { %3511 = vmatmul.mubr.msk.bf16.vlgmr.msra.gmra.mxu1 %vm429_vm3, %v2073_v21 }
0x1131   :  { %2430 = vmatprep.mubr.bf16.mxu1 %v3859_v27  ;;  %v3704_v27 = vld [vmem:[%s4768_s6 + $0x60] sm:$0xff]  }
0x1132   :  { %3521 = vmatpush3.bf16.msra.mxu0 %v3704_v27 }
0x1133   :  { %3522 = vmatprep.subr.bf16.mxu0 %v3858_v4 }
0x1136   :  { %3523 = vmatpush3.bf16.msra.mxu0 %v3705_v26 }
0x1137   :  { %3524 = vmatprep.subr.bf16.mxu0 %v3858_v4 }
0x113a   :  { %3525 = vmatpush3.bf16.msra.mxu0 %v3706_v28 }
0x113b   :  { %3526 = vmatprep.subr.bf16.mxu0 %v3858_v4 }
0x113e   :  { %3527 = vmatpush3.bf16.msra.mxu0 %v3707_v29 }
0x113f   :  { %3528 = vmatprep.subr.bf16.mxu0 %v3858_v4 }
0x1142   :  { %3529 = vmatpush3.bf16.msra.mxu0 %v3708_v35  ;;  %v3122_v35 = vld [vmem:[%s4771_s9 + $0x1] ss:$0 sm:$0xff]  ;;  %s3862_s9 = smov [#allocation2]  }
0x11e0   :  { %v1888_v30 = vpop.f32.mrf.mxu1 }
0x11e2   :  { %v3488_v33 = vpop.f32.mrf.mxu1 }
0x11e4   :  { %v1891_v62 = vpop.f32.mrf.mxu1 }
0x11e6   :  { %v3489_v34 = vpop.f32.mrf.mxu1 }
0x11e8   :  { %v2002_v36 = vpop.f32.mrf.mxu1 }
0x11ea   :  { %v3500_v50 = vpop.f32.mrf.mxu1 }
0x11ec   :  { %v2005_v37 = vpop.f32.mrf.mxu1 }
0x11ee   :  { %v3501_v38 = vpop.f32.mrf.mxu1 }
0x11f0   :  { %v2117_v39 = vpop.f32.mrf.mxu1 }
0x11f1   :  { %v3584_v51 = vpack.i.bf16 %v2117_v39, %v1888_v30  ;;  %v3121_v30 = vld [vmem:[%s4770_s8 + $0x1] ss:$0 sm:$0xff]  ;;  %v3733_v39 = vld [vmem:[%s4774_s12 + $0xf8] sm:$0xff]  }
0x11f2   :  { %v3512_v13 = vpop.f32.mrf.mxu1  ;;  %3318 = vmatprep.subr.bf16.mxu0 %v3733_v39 }
0x11f3   :  { %3585 = vrot.lane.b32.xlu1 %v3584_v51, %s3861_s28  ;;  %v3734_v51 = vld [vmem:[%s4774_s12 + $0xb8] sm:$0xff]   ;;  %v3735_v13 = vld [vmem:[%s4774_s12 + $0xf0] sm:$0xff]  }
0x11f4   :  { %v2120_v14 = vpop.f32.mrf.mxu1 }
0x11f5   :  { %v3736_v14 = vld [vmem:[%s4774_s12 + $0xb0] sm:$0xff]  }
0x11f6   :  { %v3513_v42 = vpop.f32.mrf.mxu1 }
0x11f7   :  { %v3737_v42 = vld [vmem:[%s4774_s12 + $0xe8] sm:$0xff]  }
0x1265   :  { %v3586_v43 = vpop.permute.xlu1 %3585 }
0x1266   :  { %v3588_v15 = vunpack.i.h.bf16 %v3586_v43  ;;  %v3587_v40 = vunpack.i.l.bf16 %v3586_v43  ;;  %v3738_v43 = vld [vmem:[%s4774_s12 + $0xa8] sm:$0xff]  }
0x1268   :  { %v2127_v44 = vsel %vm376_vm1, %v2002_v36, %v3588_v15  ;;  %v1898_v45 = vsel %vm376_vm1, %v4494_v41, %v3587_v40  ;;  %v3709_v41 = vld [vmem:[%s4772_s10 + $0xf0] ss:$8 sps:$4 sm:$0xff]   ;;  %v3739_v15 = vld [vmem:[%s4774_s12 + $0xe0] sm:$0xff]  }
0x1269   :  { %v2145_v46 = vpack.c.bf16 %v2127_v44, %v1898_v45  ;;  %2399 = vmatpush1.bf16.msra.mxu1 %v3709_v41  ;;  %v3740_v40 = vld [vmem:[%s4774_s12 + $0xa0] sm:$0xff]   ;;  %v3741_v44 = vld [vmem:[%s4774_s12 + $0xd8] sm:$0xff]  }
0x126a   :  { %2400 = vmatprep.subr.bf16.mxu1 %v3714_v5  ;;  %v3742_v45 = vld [vmem:[%s4774_s12 + $0x98] sm:$0xff]  }
0x126b   :  { %3531 = vmatmul.mubr.bf16.vlgmr.msra.gmra.mxu0 %v2145_v46  ;;  %v3743_v46 = vld [vmem:[%s4774_s12 + $0xd0] sm:$0xff]  }
0x126c   :  { %3319 = vmatpush3.bf16.msra.mxu0 %v3734_v51 }
0x126d   :  { %2401 = vmatpush1.bf16.msra.mxu1 %v3712_v6  ;;  %3320 = vmatprep.subr.bf16.mxu0 %v3735_v13 }
0x126e   :  { %2402 = vmatprep.subr.bf16.mxu1 %v3717_v8 }
0x1270   :  { %3321 = vmatpush3.bf16.msra.mxu0 %v3736_v14 }
0x1271   :  { %2403 = vmatpush1.bf16.msra.mxu1 %v3715_v9  ;;  %3322 = vmatprep.subr.bf16.mxu0 %v3737_v42 }
0x1272   :  { %2404 = vmatprep.subr.bf16.mxu1 %v3720_v11 }
0x1274   :  { %3323 = vmatpush3.bf16.msra.mxu0 %v3738_v43  ;;  %v3189_v43 = vld [vmem:[%s4775_s13 + $0x1] ss:$0 sm:$0xff] }
0x1275   :  { %2405 = vmatpush1.bf16.msra.mxu1 %v3718_v10  ;;  %3324 = vmatprep.subr.bf16.mxu0 %v3739_v15 }
0x1276   :  { %2406 = vmatprep.subr.bf16.mxu1 %v3723_v22 }
0x1278   :  { %3325 = vmatpush3.bf16.msra.mxu0 %v3740_v40 }
0x1279   :  { %2407 = vmatpush1.bf16.msra.mxu1 %v3721_v12  ;;  %3326 = vmatprep.subr.bf16.mxu0 %v3741_v44 }
0x127a   :  { %2408 = vmatprep.subr.bf16.mxu1 %v3726_v7 }
0x127c   :  { %3327 = vmatpush3.bf16.msra.mxu0 %v3742_v45 }
0x127d   :  { %2409 = vmatpush1.bf16.msra.mxu1 %v3724_v16  ;;  %3328 = vmatprep.subr.bf16.mxu0 %v3743_v46 }
0x127e   :  { %2410 = vmatprep.subr.bf16.mxu1 %v3729_v17 }
0x1281   :  { %2411 = vmatpush1.bf16.msra.mxu1 %v3727_v18 }
0x1282   :  { %2412 = vmatprep.subr.bf16.mxu1 %v3732_v19 }
0x1285   :  { %2413 = vmatpush1.bf16.msra.mxu1 %v3730_v20 }
0x1286   :  { %3534 = vmatprep.subr.bf16.mxu1 %v3858_v4 }
0x132b   :  { %v2236_v57 = vpop.f32.mrf.mxu0 }
0x132c   :  { %v2237_v48 = vadd.f32 %v3110_v47, %v2236_v57  ;;  %v3745_v57 = vld [vmem:[%s4774_s12 + $0xc8] sm:$0xff]  }
0x132d   :  { %v3532_v49 = vpop.f32.mrf.mxu0 }
0x132e   :  { %v2243_v52 = vadd.f32 %v2237_v48, %v4436_v31  ;;  %v3746_v48 = vld [vmem:[%s4774_s12 + $0x88] sm:$0xff]   ;;  %v3747_v49 = vld [vmem:[%s4774_s12 + $0xc0] sm:$0xff]  }
0x132f   :  { %v2239_v53 = vpop.f32.mrf.mxu0 }
0x1330   :  { %v2240_v56 = vadd.f32 %v3110_v47, %v2239_v53  ;;  %2249 = vadd.xlane.f32.xlu1 %v2243_v52  ;;  %v3744_v47 = vld [vmem:[%s4774_s12 + $0x90] sm:$0xff]   ;;  %v3139_v53 = vld [vmem:[%s4773_s11 + $0x2] sm:$0x3] }
0x1331   :  { %v3533_v58 = vpop.f32.mrf.mxu0  ;;  %3329 = vmatpush3.bf16.msra.mxu0 %v3744_v47 }
0x1332   :  { %v2244_v59 = vadd.f32 %v2240_v56, %v4438_v32  ;;  %3330 = vmatprep.subr.bf16.mxu0 %v3745_v57  ;;  %v2311_v56 = vrot.slane %v3139_v53, %v4096_v61  ;;  %v2315_v58 = vrot.slane %v3139_v53, %v4088_v55 }
0x1334   :  { %2251 = vadd.xlane.f32.xlu0 %v2244_v59 }
0x1335   :  { %3331 = vmatpush3.bf16.msra.mxu0 %v3746_v48 }
0x1336   :  { %3332 = vmatprep.subr.bf16.mxu0 %v3747_v49 }
0x13b9   :  { %v2250_v63 = vpop.xlane.xlu1 %2249 }
0x13ba   :  { %v2253_v0 = vmul.f32 0.0078125, %v2250_v63 }
0x13bc   :  { %v2255_v31 = vsub.f32 %v2243_v52, %v2253_v0  ;;  %v3748_v52 = vld [vmem:[%s4774_s12 + $0x80] sm:$0xff]  }
0x13bd   :  { %v2252_v1 = vpop.xlane.xlu0 %2251  ;;  %3333 = vmatpush3.bf16.msra.mxu0 %v3748_v52 }
0x13be   :  { %v2254_v2 = vmul.f32 0.0078125, %v2252_v1  ;;  %v2257_v3 = vmul.f32 %v2255_v31, %v2255_v31  ;;  %3554 = vmatprep.subr.bf16.mxu0 %v3858_v4 }
0x13c0   :  { %v2256_v54 = vsub.f32 %v2244_v59, %v2254_v2  ;;  %2259 = vadd.xlane.f32.xlu0 %v2257_v3 }
0x13c2   :  { %v2258_v32 = vmul.f32 %v2256_v54, %v2256_v54 }
0x13c4   :  { %2261 = vadd.xlane.f32.xlu1 %v2258_v32 }
0x1449   :  { %v2260_v21 = vpop.xlane.xlu0 %2259 }
0x144a   :  { %v2263_v23 = vmul.f32 0.0078125, %v2260_v21 }
0x144c   :  { %v2265_v24 = vadd.f32 1e-12, %v2263_v23 }
0x144d   :  { %v2262_v25 = vpop.xlane.xlu1 %2261 }
0x144e   :  { %3817 = vrsqrt.f32 %v2265_v24  ;;  %v2264_v27 = vmul.f32 0.0078125, %v2262_v25 }
0x1450   :  { %v2266_v26 = vadd.f32 1e-12, %v2264_v27 }
0x1452   :  { %3819 = vrsqrt.f32 %v2266_v26 }
0x145b   :  { %v3818_v28 = vpop.eup %3817 }
0x145c   :  { %v2269_v29 = vmul.f32 %v3818_v28, %v2255_v31 }
0x145e   :  { %v2277_v34 = vmul.f32 %v3121_v30, %v2269_v29 }
0x145f   :  { %v3820_v33 = vpop.eup %3819 }
0x1460   :  { %v2270_v62 = vmul.f32 %v3820_v33, %v2256_v54  ;;  %v4616_v50 = vadd.f32 %v3122_v35, %v2277_v34 }
0x1462   :  { %v2278_v36 = vmul.f32 %v3121_v30, %v2270_v62 }
0x1464   :  { %v4618_v37 = vadd.f32 %v3122_v35, %v2278_v36 }
0x1466   :  { %v2304_v38 = vpack.c.bf16 %v4618_v37, %v4616_v50 }
0x1468   :  { %2431 = vmatmul.mubr.bf16.vlgmr.msra.gmra.mxu1 %v2304_v38 }
0x1469   :  { %3550 = vmatprep.mubr.msk.bf16.mxu1 %vm3860_vm0, %v3858_v4 }
0x1528   :  { %v2432_v59 = vpop.f32.mrf.mxu1 }
0x1529   :  { %v2433_v41 = vadd.f32 %v2432_v59, %v2311_v56 }
0x152a   :  { %v2434_v60 = vpop.f32.mrf.mxu1 }
0x152b   :  { %v2445_v63 = vmul.f32 0.044715, %v2433_v41  ;;  %v2435_v0 = vadd.f32 %v2434_v60, %v2315_v58  ;;  %v2441_v35 = vmul.f32 0.5, %v2433_v41 }
0x152c   :  { %v2436_v31 = vpop.f32.mrf.mxu1 }
0x152d   :  { %v2449_v1 = vmul.f32 %v2445_v63, %v2433_v41  ;;  %v2446_v2 = vmul.f32 0.044715, %v2435_v0  ;;  %v2437_v3 = vadd.f32 %v2436_v31, %v2311_v56  ;;  %v2442_v33 = vmul.f32 0.5, %v2435_v0  ;;  %v3752_v31 = vld [vmem:[%s4778_s16 + $0x20] sm:$0xff]  }
0x152e   :  { %v2438_v54 = vpop.f32.mrf.mxu1 }
0x152f   :  { %v2453_v32 = vmul.f32 %v2449_v1, %v2433_v41  ;;  %v2450_v5 = vmul.f32 %v2446_v2, %v2435_v0  ;;  %v2447_v6 = vmul.f32 0.044715, %v2437_v3  ;;  %v2439_v8 = vadd.f32 %v2438_v54, %v2315_v58  ;;  %v3753_v1 = vld [vmem:[%s4778_s16 + $0x18] sm:$0xff]   ;;  %v3754_v2 = vld [vmem:[%s4778_s16 + $0x10] sm:$0xff]   ;;  %v3756_v54 = vld [vmem:[%s4778_s16] sm:$0xff]  }
0x1530   :  { %v2443_v29 = vmul.f32 0.5, %v2437_v3 }
0x1531   :  { %v2457_v9 = vadd.f32 %v2453_v32, %v2433_v41  ;;  %v2454_v10 = vmul.f32 %v2450_v5, %v2435_v0  ;;  %v2451_v11 = vmul.f32 %v2447_v6, %v2437_v3  ;;  %v2448_v61 = vmul.f32 0.044715, %v2439_v8  ;;  %v3757_v32 = vld [vmem:[%s4780_s18 + $0x38] sm:$0xff]   ;;  %v3758_v5 = vld [vmem:[%s4780_s18 + $0x30] sm:$0xff]   ;;  %v3759_v6 = vld [vmem:[%s4780_s18 + $0x28] sm:$0xff]  }
0x1532   :  { %v2444_v62 = vmul.f32 0.5, %v2439_v8 }
0x1533   :  { %v2455_v22 = vmul.f32 %v2451_v11, %v2437_v3  ;;  %v2452_v55 = vmul.f32 %v2448_v61, %v2439_v8  ;;  %v2458_v12 = vadd.f32 %v2454_v10, %v2435_v0  ;;  %v2461_v7 = vmul.f32 0.7978846, %v2457_v9  ;;  %v3749_v0 = vld [vmem:[%s4778_s16 + $0x38] sm:$0xff]  }
0x1534   :  { %3535 = vmatpush3.bf16.msra.mxu1 %v3749_v0 }
0x1535   :  { %v2459_v16 = vadd.f32 %v2455_v22, %v2437_v3  ;;  %v2456_v17 = vmul.f32 %v2452_v55, %v2439_v8  ;;  %v2462_v18 = vmul.f32 0.7978846, %v2458_v12  ;;  %3536 = vmatprep.subr.bf16.mxu1 %v3858_v4  ;;  %v3755_v3 = vld [vmem:[%s4778_s16 + $0x8] sm:$0xff]  }
0x1537   :  { %v2463_v19 = vmul.f32 0.7978846, %v2459_v16  ;;  %v2460_v20 = vadd.f32 %v2456_v17, %v2439_v8  ;;  %3821 = vtanh.f32 %v2462_v18  ;;  %v3208_v16 = vld [vmem:[%s4776_s14 + $0x1] ss:$0 sm:$0xff] }
0x1538   :  { %3823 = vtanh.f32 %v2461_v7 }
0x1539   :  { %3825 = vtanh.f32 %v2463_v19  ;;  %v2464_v21 = vmul.f32 0.7978846, %v2460_v20  ;;  %v3209_v20 = vld [vmem:[%s4777_s15 + $0x1] ss:$0 sm:$0xff] }
0x153b   :  { %3827 = vtanh.f32 %v2464_v21 }
0x1544   :  { %v3822_v23 = vpop.eup %3821 }
0x1545   :  { %v3824_v24 = vpop.eup %3823  ;;  %v2470_v27 = vadd.f32 1.0, %v3822_v23 }
0x1546   :  { %v3826_v25 = vpop.eup %3825  ;;  %v2469_v30 = vadd.f32 1.0, %v3824_v24 }
0x1547   :  { %v2471_v26 = vadd.f32 1.0, %v3826_v25  ;;  %v2474_v38 = vmul.f32 %v2470_v27, %v2442_v33  ;;  %v3764_v33 = vld [vmem:[%s4780_s18] sm:$0xff]  }
0x1548   :  { %v3828_v28 = vpop.eup %3827  ;;  %v2473_v51 = vmul.f32 %v2469_v30, %v2441_v35  ;;  %v3763_v30 = vld [vmem:[%s4780_s18 + $0x8] sm:$0xff]  }
0x1549   :  { %v2472_v34 = vadd.f32 1.0, %v3828_v28  ;;  %v2475_v36 = vmul.f32 %v2471_v26, %v2443_v29  ;;  %v3760_v26 = vld [vmem:[%s4780_s18 + $0x20] sm:$0xff]   ;;  %v3761_v28 = vld [vmem:[%s4780_s18 + $0x18] sm:$0xff]   ;;  %v3762_v29 = vld [vmem:[%s4780_s18 + $0x10] sm:$0xff]   ;;  %s2938_s18 = sshll.u32 %s3862_s9, 4  ;;  %s2939_s18 = int_to_ptr.vmem [resolvable:$true] %s2938_s18 }
0x154a   :  { %p3841_p1 = scmp.lt.s32.totalorder %s2939_s18, %s2939_s18 }
0x154b   :  { %v2476_v39 = vmul.f32 %v2472_v34, %v2444_v62  ;;  %v2510_v14 = vpack.c.bf16 %v2475_v36, %v2473_v51  ;;  %v3210_v62 = vld [vmem:[%s4779_s17] ss:$0 sm:$0xff]  ;;  %s3836_s17 = scalar_lea.vmem %s2939_s18, 32 }
0x154c   :  { %p3837_p0 = scmp.ne.s32.totalorder %s2939_s18, %s3836_s17  ;;  %p3842_p2 = scmp.lt.s32.totalorder %s3836_s17, %s3836_s17 }
0x154d   :  { %v2511_v13 = vpack.c.bf16 %v2476_v39, %v2474_v38 }
0x154e   :  { %p3843_p3 = por %p3842_p2, %p3841_p1 }
0x154f   :  { %2648 = vmatprep.mubr.bf16.mxu0 %v2511_v13 }
0x1550   :  { %2649 = vmatmul.mubr.bf16.vlgmr.msra.gmra.mxu0 %v2510_v14  ;;  %p3844_p4 = pnand %p3843_p3, %p3837_p0 }
0x1551   :  { %3570 = vmatprep.mubr.msk.bf16.mxu0 %vm3860_vm0, %v3858_v4  ;;  %3555 = vmatpush3.bf16.msra.mxu0 %v3757_v32 }
0x1552   :  { %3556 = vmatprep.subr.bf16.mxu0 %v3858_v4 }
0x1555   :  { %3557 = vmatpush3.bf16.msra.mxu0 %v3758_v5 }
0x1556   :  { %3558 = vmatprep.subr.bf16.mxu0 %v3858_v4 }
0x1559   :  { %3559 = vmatpush3.bf16.msra.mxu0 %v3759_v6 }
0x155a   :  { %3560 = vmatprep.subr.bf16.mxu0 %v3858_v4 }
0x155d   :  { %3561 = vmatpush3.bf16.msra.mxu0 %v3760_v26 }
0x155e   :  { %3562 = vmatprep.subr.bf16.mxu0 %v3858_v4 }
0x1561   :  { %3563 = vmatpush3.bf16.msra.mxu0 %v3761_v28 }
0x1562   :  { %3564 = vmatprep.subr.bf16.mxu0 %v3858_v4 }
0x1565   :  { %3565 = vmatpush3.bf16.msra.mxu0 %v3762_v29 }
0x1566   :  { %3566 = vmatprep.subr.bf16.mxu0 %v3858_v4 }
0x1569   :  { %3567 = vmatpush3.bf16.msra.mxu0 %v3763_v30 }
0x156a   :  { %3568 = vmatprep.subr.bf16.mxu0 %v3858_v4 }
0x156d   :  { %3569 = vmatpush3.bf16.msra.mxu0 %v3764_v33 }
0x1610   :  { %v3334_v42 = vpop.f32.mrf.mxu0 }
0x1612   :  { %v3335_v15 = vpop.f32.mrf.mxu0 }
0x1613   :  { %v3336_v40 = vadd.f32 %v3335_v15, %v3334_v42 }
0x1614   :  { %v3337_v44 = vpop.f32.mrf.mxu0 }
0x1615   :  { %v2651_v45 = vadd.f32 %v3336_v40, %v3189_v43 }
0x1616   :  { %v3338_v46 = vpop.f32.mrf.mxu0 }
0x1617   :  { %v3339_v47 = vadd.f32 %v3338_v46, %v3337_v44  ;;  %v2657_v57 = vadd.f32 %v2651_v45, %v4616_v50  ;;  %v3750_v50 = vld [vmem:[%s4778_s16 + $0x30] sm:$0xff]  }
0x1618   :  { %3537 = vmatpush3.bf16.msra.mxu1 %v3750_v50 }
0x1619   :  { %v2654_v48 = vadd.f32 %v3339_v47, %v3189_v43  ;;  %2663 = vadd.xlane.f32.xlu1 %v2657_v57  ;;  %3538 = vmatprep.subr.bf16.mxu1 %v3858_v4 }
0x161b   :  { %v2658_v49 = vadd.f32 %v2654_v48, %v4618_v37  ;;  %v3751_v37 = vld [vmem:[%s4778_s16 + $0x28] sm:$0xff]  }
0x161c   :  { %3539 = vmatpush3.bf16.msra.mxu1 %v3751_v37 }
0x161d   :  { %2665 = vadd.xlane.f32.xlu0 %v2658_v49  ;;  %3540 = vmatprep.subr.bf16.mxu1 %v3858_v4 }
0x1620   :  { %3541 = vmatpush3.bf16.msra.mxu1 %v3752_v31 }
0x1621   :  { %3542 = vmatprep.subr.bf16.mxu1 %v3858_v4 }
0x1624   :  { %3543 = vmatpush3.bf16.msra.mxu1 %v3753_v1 }
0x1625   :  { %3544 = vmatprep.subr.bf16.mxu1 %v3858_v4 }
0x1628   :  { %3545 = vmatpush3.bf16.msra.mxu1 %v3754_v2 }
0x1629   :  { %3546 = vmatprep.subr.bf16.mxu1 %v3858_v4 }
0x162c   :  { %3547 = vmatpush3.bf16.msra.mxu1 %v3755_v3 }
0x162d   :  { %3548 = vmatprep.subr.bf16.mxu1 %v3858_v4  ;;  %v3219_v4 = vld [vmem:[%s4781_s19] ss:$0 sm:$0xff] }
0x1630   :  { %3549 = vmatpush3.bf16.msra.mxu1 %v3756_v54 }
0x16a2   :  { %v2664_v52 = vpop.xlane.xlu1 %2663 }
0x16a3   :  { %v2667_v53 = vmul.f32 0.0078125, %v2664_v52 }
0x16a5   :  { %v2669_v56 = vsub.f32 %v2657_v57, %v2667_v53 }
0x16a6   :  { %v2666_v58 = vpop.xlane.xlu0 %2665 }
0x16a7   :  { %v2668_v59 = vmul.f32 0.0078125, %v2666_v58  ;;  %v2671_v41 = vmul.f32 %v2669_v56, %v2669_v56 }
0x16a9   :  { %v2670_v60 = vsub.f32 %v2658_v49, %v2668_v59  ;;  %2673 = vadd.xlane.f32.xlu1 %v2671_v41 }
0x16ab   :  { %v2672_v63 = vmul.f32 %v2670_v60, %v2670_v60 }
0x16ad   :  { %2675 = vadd.xlane.f32.xlu0 %v2672_v63 }
0x1732   :  { %v2674_v8 = vpop.xlane.xlu1 %2673 }
0x1733   :  { %v2677_v9 = vmul.f32 0.0078125, %v2674_v8 }
0x1735   :  { %v2679_v10 = vadd.f32 1e-12, %v2677_v9 }
0x1736   :  { %v2676_v11 = vpop.xlane.xlu0 %2675 }
0x1737   :  { %3829 = vrsqrt.f32 %v2679_v10  ;;  %v2678_v61 = vmul.f32 0.0078125, %v2676_v11 }
0x1739   :  { %v2680_v22 = vadd.f32 1e-12, %v2678_v61 }
0x173b   :  { %3831 = vrsqrt.f32 %v2680_v22 }
0x1744   :  { %v3830_v55 = vpop.eup %3829 }
0x1745   :  { %v2683_v12 = vmul.f32 %v3830_v55, %v2669_v56 }
0x1747   :  { %v2691_v18 = vmul.f32 %v3208_v16, %v2683_v12 }
0x1748   :  { %v3832_v7 = vpop.eup %3831 }
0x1749   :  { %v2684_v17 = vmul.f32 %v3832_v7, %v2670_v60  ;;  %v2699_v23 = vadd.f32 %v3209_v20, %v2691_v18 }
0x174b   :  { %v2692_v19 = vmul.f32 %v3208_v16, %v2684_v17 }
0x174d   :  { %v2700_v21 = vadd.f32 %v3209_v20, %v2692_v19 }
0x174f   :  { %v2702_v24 = vrot.slane %v2700_v21, 7 }
0x1751   :  { %v2705_v25 = vsel %vm2704_vm4, %v2699_v23, %v2702_v24 }
0x1752   :  { %v2722_v27 = vpack.c.bf16 %v2705_v25, %v2705_v25 }
0x1754   :  { %3551 = vmatmul.mubr.bf16.vlgmr.msra.gmra.mxu1 %v2722_v27 }
0x1814   :  { %v2812_v34 = vpop.f32.mrf.mxu1 }
0x1815   :  { %v2813_v35 = vadd.f32 %v3210_v62, %v2812_v34 }
0x1816   :  { %v3552_v36 = vpop.f32.mrf.mxu1 }
0x1817   :  { %3833 = vtanh.f32 %v2813_v35 }
0x1818   :  { %v2815_v38 = vpop.f32.mrf.mxu1 }
0x181a   :  { %v3553_v39 = vpop.f32.mrf.mxu1 }
0x1824   :  { %v3834_v51 = vpop.eup %3833 }
0x1825   :  { %v2835_v13 = vpack.c.bf16 %v3834_v51, %v3834_v51 }
0x1827   :  { %3571 = vmatmul.mubr.bf16.vlgmr.msra.gmra.mxu0 %v2835_v13 }
0x18e7   :  { %v2925_v14 = vpop.f32.mrf.mxu0 }
0x18e8   :  { %v2926_v42 = vadd.f32 %v3219_v4, %v2925_v14 }
0x18e9   :  { %v3572_v43 = vpop.f32.mrf.mxu0 }
0x18ea   :  { %2931 = vst [vmem:[#allocation2] sm:$0x3] %v2926_v42 }
0x18eb   :  { %v2928_v15 = vpop.f32.mrf.mxu0 }
0x18ec   :  { %3847 = shalt.err (!%p3844_p4)
}
0x18ed   :  { %2941 = dma.vmem_to_hbm [thread:$0]  %s2939_s18, 32, %s4782_s20, [#allocation3]   ;;  %v3573_v40 = vpop.f32.mrf.mxu0 }
0x18ee   :  { %3856 = dma.done.wait [#allocation3], 32  }
0x18ef   :  { %3857 = vsyncadd [#allocation3], 4294967264 }
0x18f0   :  { %2945 = vsyncpa [#allocation3], 1 }

</bundles_post_ra>
